<compile_context>
chip_gen: v7x
topology: tpu7x:2x2x1
jax: 0.10.0
libtpu: 0.0.40
codegen_flags: <defaults>
</compile_context>

<pallas_src>
import functools

import jax
import jax.numpy as jnp
import numpy as np
from jax.experimental import pallas as pl
from jax.experimental.pallas import tpu as pltpu

_EPS = 1e-5  # nn.BatchNorm2d default eps


# ----------------------------- Pallas kernels ------------------------------ #

def _gemm_stats_kernel(a_ref, w_ref, y_ref, sum_ref, sq_ref):
    """Pass 1: (tile_m, K) x (K, C) GEMM on the MXU + per-channel sum / sum^2 accumulation."""
    i = pl.program_id(0)
    y = jnp.dot(a_ref[...], w_ref[...], preferred_element_type=jnp.float32)
    y_ref[...] = y

    @pl.when(i == 0)
    def _():
        sum_ref[...] = jnp.zeros_like(sum_ref)
        sq_ref[...] = jnp.zeros_like(sq_ref)

    # Single sweep: accumulate sum(y) and sum(y*y); mean/var derived in pass 2.
    sum_ref[...] += jnp.sum(y, axis=0, keepdims=True)
    sq_ref[...] += jnp.sum(y * y, axis=0, keepdims=True)


def _bn_scale_shift(sum_v, sq_v, gamma, beta, inv_m):
    mean = sum_v * inv_m
    var = sq_v * inv_m - mean * mean
    scale = gamma * jax.lax.rsqrt(var + _EPS)
    shift = beta - mean * scale
    return scale, shift


def _bn_kernel(y_ref, sum_ref, sq_ref, g_ref, b_ref, o_ref, *, inv_m, relu):
    scale, shift = _bn_scale_shift(sum_ref[...], sq_ref[...],
                                   g_ref[...], b_ref[...], inv_m)
    y = y_ref[...] * scale + shift
    if relu:
        y = jnp.maximum(y, 0.0)
    o_ref[...] = y.astype(o_ref.dtype)


def _bn_add_kernel(y_ref, sum_ref, sq_ref, g_ref, b_ref, r_ref, o_ref, *, inv_m, relu):
    scale, shift = _bn_scale_shift(sum_ref[...], sq_ref[...],
                                   g_ref[...], b_ref[...], inv_m)
    y = y_ref[...] * scale + shift + r_ref[...]
    if relu:
        y = jnp.maximum(y, 0.0)
    o_ref[...] = y.astype(o_ref.dtype)


def _bn_bn_add_kernel(y_ref, sum_ref, sq_ref, g_ref, b_ref,
                      ys_ref, ssum_ref, ssq_ref, gs_ref, bs_ref, o_ref, *, inv_m, relu):
    """Fused: bn2(y2) + bn_shortcut(y_s), then (optional) ReLU."""
    scale, shift = _bn_scale_shift(sum_ref[...], sq_ref[...],
                                   g_ref[...], b_ref[...], inv_m)
    scale_s, shift_s = _bn_scale_shift(ssum_ref[...], ssq_ref[...],
                                       gs_ref[...], bs_ref[...], inv_m)
    y = (y_ref[...] * scale + shift) + (ys_ref[...] * scale_s + shift_s)
    if relu:
        y = jnp.maximum(y, 0.0)
    o_ref[...] = y.astype(o_ref.dtype)


# ----------------------------- pallas_call wrappers ------------------------ #

_VMEM_LIMIT = 32 * 1024 * 1024  # explicit scoped-VMEM budget (safe for v5e/v6e/v7x)


def _round_up(x, m):
    return (x + m - 1) // m * m


def _choose_tile_m(m):
    # ~512-row tiles: amortize per-grid-step overhead while fitting v7x's 64 MiB VMEM
    # with double-buffered input/output tiles.
    tile = 512
    if m <= tile:
        return _round_up(max(m, 8), 8)
    return tile


def conv_gemm_stats(a, w, tile_m):
    """a: (Mp, K) bf16, zero-row-padded to a multiple of tile_m; w: (K, C) bf16.

    Returns y (Mp, C) f32 plus per-channel (sum, sumsq), each (1, C) f32, reduced
    over ALL Mp rows (padded rows are all-zero, contributing nothing)."""
    mp, k = a.shape
    c = w.shape[1]
    grid = (mp // tile_m,)
    cost = pl.CostEstimate(
        flops=int(2 * mp * k * c),
        transcendentals=0,
        bytes_accessed=int(mp * k * 2 + k * c * 2 + mp * c * 4 + 2 * c * 4))
    return pl.pallas_call(
        _gemm_stats_kernel,
        grid=grid,
        in_specs=[
            pl.BlockSpec((tile_m, k), lambda i: (i, 0)),
            pl.BlockSpec((k, c), lambda i: (0, 0)),
        ],
        out_specs=[
            pl.BlockSpec((tile_m, c), lambda i: (i, 0)),
            pl.BlockSpec((1, c), lambda i: (0, 0)),
            pl.BlockSpec((1, c), lambda i: (0, 0)),
        ],
        out_shape=[
            jax.ShapeDtypeStruct((mp, c), jnp.float32),
            jax.ShapeDtypeStruct((1, c), jnp.float32),
            jax.ShapeDtypeStruct((1, c), jnp.float32),
        ],
        compiler_params=pltpu.CompilerParams(
            dimension_semantics=("arbitrary",),   # resident stats accumulator
            vmem_limit_bytes=_VMEM_LIMIT),
        cost_estimate=cost,
    )(a, w)


def bn_epilogue(y, stats, gamma, beta, m_true, tile_m, relu,
                residual=None, residual_stats=None,
                residual_gamma=None, residual_beta=None):
    """Pass 2: normalize y with full-batch stats, optional residual (+ its own BN), ReLU."""
    mp, c = y.shape
    grid = (mp // tile_m,)
    inv_m = 1.0 / float(m_true)
    gamma = gamma.reshape(1, c).astype(jnp.float32)
    beta = beta.reshape(1, c).astype(jnp.float32)
    s, sq = stats

    tile_spec = pl.BlockSpec((tile_m, c), lambda i: (i, 0))
    vec_spec = pl.BlockSpec((1, c), lambda i: (0, 0))

    inputs = [y, s, sq, gamma, beta]
    in_specs = [tile_spec, vec_spec, vec_spec, vec_spec, vec_spec]
    bytes_acc = mp * c * 4 * 2 + 4 * c * 4
    transc = c

    if residual is None:
        kernel = functools.partial(_bn_kernel, inv_m=inv_m, relu=relu)
    elif residual_stats is None:
        inputs.append(residual)
        in_specs.append(tile_spec)
        bytes_acc += mp * c * 4
        kernel = functools.partial(_bn_add_kernel, inv_m=inv_m, relu=relu)
    else:
        rs, rsq = residual_stats
        inputs += [residual, rs, rsq,
                   residual_gamma.reshape(1, c).astype(jnp.float32),
                   residual_beta.reshape(1, c).astype(jnp.float32)]
        in_specs += [tile_spec, vec_spec, vec_spec, vec_spec, vec_spec]
        bytes_acc += mp * c * 4 + 4 * c * 4
        transc = 2 * c
        kernel = functools.partial(_bn_bn_add_kernel, inv_m=inv_m, relu=relu)

    cost = pl.CostEstimate(flops=int(6 * mp * c), transcendentals=int(transc),
                           bytes_accessed=int(bytes_acc))
    return pl.pallas_call(
        kernel,
        grid=grid,
        in_specs=in_specs,
        out_specs=tile_spec,
        out_shape=jax.ShapeDtypeStruct((mp, c), jnp.float32),
        compiler_params=pltpu.CompilerParams(
            dimension_semantics=("parallel",),    # fully parallel normalize pass
            vmem_limit_bytes=_VMEM_LIMIT),
        cost_estimate=cost,
    )(*inputs)


# ------------------------------ JAX glue ----------------------------------- #

def _im2col(x_nhwc, ksize, stride, pad):
    """Extract conv patches. Returns (N*Ho*Wo, ksize*ksize*C), Ho, Wo."""
    n, h, w, c = x_nhwc.shape
    xp = jnp.pad(x_nhwc, ((0, 0), (pad, pad), (pad, pad), (0, 0)))
    ho = (h + 2 * pad - ksize) // stride + 1
    wo = (w + 2 * pad - ksize) // stride + 1
    cols = []
    for kh in range(ksize):
        for kw in range(ksize):
            cols.append(
                xp[:, kh:kh + stride * ho:stride, kw:kw + stride * wo:stride, :])
    p = jnp.stack(cols, axis=3)                     # (n, ho, wo, k*k, c)
    return p.reshape(n * ho * wo, ksize * ksize * c), ho, wo


def _oihw_to_gemm(w):
    """PyTorch conv weight (C_out, C_in, kh, kw) -> (kh*kw*C_in, C_out)."""
    return jnp.transpose(w, (2, 3, 1, 0)).reshape(-1, w.shape[0])


def init_basic_block_params(key, in_planes, planes, stride):
    ks = jax.random.split(key, 9)
    params = {
        "conv1_w": 0.2 * jax.random.normal(ks[0], (planes, in_planes, 3, 3), jnp.float32),
        "bn1_gamma": 1.0 + 0.1 * jax.random.normal(ks[1], (planes,), jnp.float32),
        "bn1_beta": 0.1 * jax.random.normal(ks[2], (planes,), jnp.float32),
        "conv2_w": 0.2 * jax.random.normal(ks[3], (planes, planes, 3, 3), jnp.float32),
        "bn2_gamma": 1.0 + 0.1 * jax.random.normal(ks[4], (planes,), jnp.float32),
        "bn2_beta": 0.1 * jax.random.normal(ks[5], (planes,), jnp.float32),
    }
    if stride != 1 or in_planes != planes:
        # option='B' shortcut: 1x1 conv (stride) + BN
        params.update({
            "convs_w": 0.2 * jax.random.normal(ks[6], (planes, in_planes, 1, 1), jnp.float32),
            "bns_gamma": 1.0 + 0.1 * jax.random.normal(ks[7], (planes,), jnp.float32),
            "bns_beta": 0.1 * jax.random.normal(ks[8], (planes,), jnp.float32),
        })
    return params


def basic_block_forward(params, x_nchw, in_planes, planes, stride):
    n, _, h, w = x_nchw.shape
    x_nhwc = jnp.transpose(x_nchw, (0, 2, 3, 1)).astype(jnp.float32)

    ho = (h + 2 - 3) // stride + 1
    wo = (w + 2 - 3) // stride + 1
    m = n * ho * wo
    tile_m = _choose_tile_m(m)
    mp = _round_up(m, tile_m)

    def pad_rows(a):
        pad = mp - a.shape[0]
        return jnp.pad(a, ((0, pad), (0, 0))) if pad else a

    # conv1 (3x3, stride, pad 1): pass 1 (bf16 GEMM + stats), pass 2 (BN + ReLU)
    a1, _, _ = _im2col(x_nhwc.astype(jnp.bfloat16), 3, stride, 1)
    w1 = _oihw_to_gemm(params["conv1_w"]).astype(jnp.bfloat16)
    y1, s1, q1 = conv_gemm_stats(pad_rows(a1), w1, tile_m)
    out1 = bn_epilogue(y1, (s1, q1), params["bn1_gamma"], params["bn1_beta"],
                       m, tile_m, relu=True)

    # conv2 (3x3, stride 1, pad 1): pass 1
    out1_nhwc = out1[:m].reshape(n, ho, wo, planes)
    a2, _, _ = _im2col(out1_nhwc.astype(jnp.bfloat16), 3, 1, 1)
    w2 = _oihw_to_gemm(params["conv2_w"]).astype(jnp.bfloat16)
    y2, s2, q2 = conv_gemm_stats(pad_rows(a2), w2, tile_m)

    if stride != 1 or in_planes != planes:
        # option 'B' projection shortcut: 1x1 strided conv pass 1, BN fused into final epilogue.
        xs = x_nhwc[:, ::stride, ::stride, :].reshape(m, in_planes).astype(jnp.bfloat16)
        ws = _oihw_to_gemm(params["convs_w"]).astype(jnp.bfloat16)
        ys, ss, qs = conv_gemm_stats(pad_rows(xs), ws, tile_m)
        out = bn_epilogue(y2, (s2, q2), params["bn2_gamma"], params["bn2_beta"],
                          m, tile_m, relu=True,
                          residual=ys, residual_stats=(ss, qs),
                          residual_gamma=params["bns_gamma"],
                          residual_beta=params["bns_beta"])
    else:
        # identity shortcut: feed x directly through its own M-tiled BlockSpec (no extra copy
        # beyond zero-row padding).
        res = pad_rows(x_nhwc.reshape(m, planes))
        out = bn_epilogue(y2, (s2, q2), params["bn2_gamma"], params["bn2_beta"],
                          m, tile_m, relu=True, residual=res)

    return jnp.transpose(out[:m].reshape(n, ho, wo, planes), (0, 3, 1, 2))


# ------------------------- pure-JAX reference ------------------------------ #

def _bn_train_ref(y, gamma, beta):
    mean = y.mean(axis=(0, 2, 3), keepdims=True)
    var = ((y - mean) ** 2).mean(axis=(0, 2, 3), keepdims=True)
    return ((y - mean) / jnp.sqrt(var + _EPS)
            * gamma[None, :, None, None] + beta[None, :, None, None])


def basic_block_reference(params, x, in_planes, planes, stride):
    dn = ("NCHW", "OIHW", "NCHW")
    y = jax.lax.conv_general_dilated(x, params["conv1_w"], (stride, stride),
                                     ((1, 1), (1, 1)), dimension_numbers=dn)
    y = jax.nn.relu(_bn_train_ref(y, params["bn1_gamma"], params["bn1_beta"]))
    z = jax.lax.conv_general_dilated(y, params["conv2_w"], (1, 1),
                                     ((1, 1), (1, 1)), dimension_numbers=dn)
    z = _bn_train_ref(z, params["bn2_gamma"], params["bn2_beta"])
    if stride != 1 or in_planes != planes:
        s = jax.lax.conv_general_dilated(x, params["convs_w"], (stride, stride),
                                         ((0, 0), (0, 0)), dimension_numbers=dn)
        s = _bn_train_ref(s, params["bns_gamma"], params["bns_beta"])
    else:
        s = x
    return jax.nn.relu(z + s)


# ---------------------------------- main ----------------------------------- #

if __name__ == "__main__":
    configs = [
        # (in_planes, planes, stride)  -- projection ('B') shortcut and identity shortcut
        (4, 8, 2),
        (8, 8, 1),
    ]
    N, H, W = 2, 16, 16
    key = jax.random.PRNGKey(0)

    for cfg_idx, (in_planes, planes, stride) in enumerate(configs):
        k_params, k_x, key = jax.random.split(key, 3)
        params = init_basic_block_params(k_params, in_planes, planes, stride)
        x = jax.random.normal(k_x, (N, in_planes, H, W), jnp.float32)

        fwd = jax.jit(functools.partial(basic_block_forward, in_planes=in_planes,
                                        planes=planes, stride=stride))
        out = jax.block_until_ready(fwd(params, x))
        ref = jax.block_until_ready(
            basic_block_reference(params, x, in_planes, planes, stride))

        assert out.shape == ref.shape, (out.shape, ref.shape)
        # bf16 GEMM operands (f32 accumulation) -> tolerance loosened vs. pure f32.
        np.testing.assert_allclose(np.asarray(out), np.asarray(ref),
                                   rtol=5e-2, atol=5e-2)

    print("KERNEL_OK")
</pallas_src>

<mosaic_0001>
module attributes {stable_mosaic.version = 11 : i64} {
  func.func @_gemm_stats_kernel(%arg0: i32, %arg1: memref<128x36xbf16, #tpu.memory_space<vmem>>, %arg2: memref<36x8xbf16, #tpu.memory_space<vmem>>, %arg3: memref<128x8xf32, #tpu.memory_space<vmem>>, %arg4: memref<1x8xf32, #tpu.memory_space<vmem>>, %arg5: memref<1x8xf32, #tpu.memory_space<vmem>>) attributes {dimension_semantics = [#tpu.dimension_semantics<arbitrary>], iteration_bounds = array<i64: 1>, scalar_prefetch = 0 : i64, scratch_operands = 0 : i64, tpu.core_type = #tpu.core_type<tc>, window_params = [{transform_indices = @transform_0, window_bounds = array<i64: 128, 36>}, {pipeline_mode = #tpu.pipeline_mode<synchronous>, transform_indices = @transform_1, window_bounds = array<i64: 36, 8>}, {transform_indices = @transform_2, window_bounds = array<i64: 128, 8>}, {pipeline_mode = #tpu.pipeline_mode<synchronous>, transform_indices = @transform_3, window_bounds = array<i64: 1, 8>}, {pipeline_mode = #tpu.pipeline_mode<synchronous>, transform_indices = @transform_4, window_bounds = array<i64: 1, 8>}]} {
    %c0 = arith.constant 0 : index
    %c0_0 = arith.constant 0 : index
    %0 = vector.load %arg1[%c0, %c0_0] : memref<128x36xbf16, #tpu.memory_space<vmem>>, vector<128x36xbf16>
    %c0_1 = arith.constant 0 : index
    %c0_2 = arith.constant 0 : index
    %1 = vector.load %arg2[%c0_1, %c0_2] : memref<36x8xbf16, #tpu.memory_space<vmem>>, vector<36x8xbf16>
    %cst = arith.constant dense<0.000000e+00> : vector<128x8xf32>
    %2 = tpu.matmul %0, %1, %cst {dimension_numbers = #tpu.dot_dimension_numbers<[1], [0], [0], [1], [0, 0, 1, 1], [], []>} : vector<128x36xbf16>, vector<36x8xbf16>, vector<128x8xf32> -> vector<128x8xf32>
    %c0_3 = arith.constant 0 : index
    %c0_4 = arith.constant 0 : index
    %3 = vector.load %arg3[%c0_3, %c0_4] : memref<128x8xf32, #tpu.memory_space<vmem>>, vector<128x8xf32>
    tpu.vector_store %arg3[%c0_3, %c0_4], %2 {strides = array<i32>} : memref<128x8xf32, #tpu.memory_space<vmem>>, vector<128x8xf32>,
    %c0_i32 = arith.constant 0 : i32
    %4 = arith.cmpi eq, %arg0, %c0_i32 : i32
    %5 = arith.extui %4 : i1 to i32
    %c0_i32_5 = arith.constant 0 : i32
    %6 = arith.cmpi ne, %5, %c0_i32_5 : i32
    scf.if %6 {
      %cst_16 = arith.constant 0.000000e+00 : f32
      %18 = vector.broadcast %cst_16 : f32 to vector<1x8xf32>
      %c0_17 = arith.constant 0 : index
      %c0_18 = arith.constant 0 : index
      %19 = vector.load %arg4[%c0_17, %c0_18] : memref<1x8xf32, #tpu.memory_space<vmem>>, vector<1x8xf32>
      tpu.vector_store %arg4[%c0_17, %c0_18], %18 {strides = array<i32>} : memref<1x8xf32, #tpu.memory_space<vmem>>, vector<1x8xf32>,
      %cst_19 = arith.constant 0.000000e+00 : f32
      %20 = vector.broadcast %cst_19 : f32 to vector<1x8xf32>
      %c0_20 = arith.constant 0 : index
      %c0_21 = arith.constant 0 : index
      %21 = vector.load %arg5[%c0_20, %c0_21] : memref<1x8xf32, #tpu.memory_space<vmem>>, vector<1x8xf32>
      tpu.vector_store %arg5[%c0_20, %c0_21], %20 {strides = array<i32>} : memref<1x8xf32, #tpu.memory_space<vmem>>, vector<1x8xf32>,
    } else {
    }
    %c0_6 = arith.constant 0 : index
    %c0_7 = arith.constant 0 : index
    %7 = vector.load %arg4[%c0_6, %c0_7] : memref<1x8xf32, #tpu.memory_space<vmem>>, vector<1x8xf32>
    %cst_8 = arith.constant dense<0.000000e+00> : vector<8xf32>
    %8 = vector.multi_reduction <add>, %2, %cst_8 [0] : vector<128x8xf32> to vector<8xf32>
    %9 = vector.shape_cast %8 : vector<8xf32> to vector<1x8xf32>
    %10 = arith.addf %7, %9 : vector<1x8xf32>
    %c0_9 = arith.constant 0 : index
    %c0_10 = arith.constant 0 : index
    %11 = vector.load %arg4[%c0_9, %c0_10] : memref<1x8xf32, #tpu.memory_space<vmem>>, vector<1x8xf32>
    tpu.vector_store %arg4[%c0_9, %c0_10], %10 {strides = array<i32>} : memref<1x8xf32, #tpu.memory_space<vmem>>, vector<1x8xf32>,
    %c0_11 = arith.constant 0 : index
    %c0_12 = arith.constant 0 : index
    %12 = vector.load %arg5[%c0_11, %c0_12] : memref<1x8xf32, #tpu.memory_space<vmem>>, vector<1x8xf32>
    %13 = arith.mulf %2, %2 : vector<128x8xf32>
    %cst_13 = arith.constant dense<0.000000e+00> : vector<8xf32>
    %14 = vector.multi_reduction <add>, %13, %cst_13 [0] : vector<128x8xf32> to vector<8xf32>
    %15 = vector.shape_cast %14 : vector<8xf32> to vector<1x8xf32>
    %16 = arith.addf %12, %15 : vector<1x8xf32>
    %c0_14 = arith.constant 0 : index
    %c0_15 = arith.constant 0 : index
    %17 = vector.load %arg5[%c0_14, %c0_15] : memref<1x8xf32, #tpu.memory_space<vmem>>, vector<1x8xf32>
    tpu.vector_store %arg5[%c0_14, %c0_15], %16 {strides = array<i32>} : memref<1x8xf32, #tpu.memory_space<vmem>>, vector<1x8xf32>,
    return
  }
  func.func @transform_0(%arg0: i32) -> (i32, i32) {
    %c0_i32 = arith.constant 0 : i32
    %c0_i32_0 = arith.constant 0 : i32
    return %arg0, %c0_i32 : i32, i32
  }
  func.func @transform_1(%arg0: i32) -> (i32, i32) {
    %c0_i32 = arith.constant 0 : i32
    %c0_i32_0 = arith.constant 0 : i32
    %c0_i32_1 = arith.constant 0 : i32
    return %c0_i32, %c0_i32_0 : i32, i32
  }
  func.func @transform_2(%arg0: i32) -> (i32, i32) {
    %c0_i32 = arith.constant 0 : i32
    %c0_i32_0 = arith.constant 0 : i32
    return %arg0, %c0_i32 : i32, i32
  }
  func.func @transform_3(%arg0: i32) -> (i32, i32) {
    %c0_i32 = arith.constant 0 : i32
    %c0_i32_0 = arith.constant 0 : i32
    %c0_i32_1 = arith.constant 0 : i32
    return %c0_i32, %c0_i32_0 : i32, i32
  }
  func.func @transform_4(%arg0: i32) -> (i32, i32) {
    %c0_i32 = arith.constant 0 : i32
    %c0_i32_0 = arith.constant 0 : i32
    %c0_i32_1 = arith.constant 0 : i32
    return %c0_i32, %c0_i32_0 : i32, i32
  }
}

module attributes {stable_mosaic.version = 11 : i64} {
  func.func @_bn_kernel(%arg0: i32, %arg1: memref<128x8xf32, #tpu.memory_space<vmem>>, %arg2: memref<1x8xf32, #tpu.memory_space<vmem>>, %arg3: memref<1x8xf32, #tpu.memory_space<vmem>>, %arg4: memref<1x8xf32, #tpu.memory_space<vmem>>, %arg5: memref<1x8xf32, #tpu.memory_space<vmem>>, %arg6: memref<128x8xf32, #tpu.memory_space<vmem>>) attributes {dimension_semantics = [#tpu.dimension_semantics<parallel>], iteration_bounds = array<i64: 1>, scalar_prefetch = 0 : i64, scratch_operands = 0 : i64, tpu.core_type = #tpu.core_type<tc>, window_params = [{transform_indices = @transform_0, window_bounds = array<i64: 128, 8>}, {pipeline_mode = #tpu.pipeline_mode<synchronous>, transform_indices = @transform_1, window_bounds = array<i64: 1, 8>}, {pipeline_mode = #tpu.pipeline_mode<synchronous>, transform_indices = @transform_2, window_bounds = array<i64: 1, 8>}, {pipeline_mode = #tpu.pipeline_mode<synchronous>, transform_indices = @transform_3, window_bounds = array<i64: 1, 8>}, {pipeline_mode = #tpu.pipeline_mode<synchronous>, transform_indices = @transform_4, window_bounds = array<i64: 1, 8>}, {transform_indices = @transform_5, window_bounds = array<i64: 128, 8>}]} {
    %c0 = arith.constant 0 : index
    %c0_0 = arith.constant 0 : index
    %0 = vector.load %arg2[%c0, %c0_0] : memref<1x8xf32, #tpu.memory_space<vmem>>, vector<1x8xf32>
    %c0_1 = arith.constant 0 : index
    %c0_2 = arith.constant 0 : index
    %1 = vector.load %arg3[%c0_1, %c0_2] : memref<1x8xf32, #tpu.memory_space<vmem>>, vector<1x8xf32>
    %c0_3 = arith.constant 0 : index
    %c0_4 = arith.constant 0 : index
    %2 = vector.load %arg4[%c0_3, %c0_4] : memref<1x8xf32, #tpu.memory_space<vmem>>, vector<1x8xf32>
    %c0_5 = arith.constant 0 : index
    %c0_6 = arith.constant 0 : index
    %3 = vector.load %arg5[%c0_5, %c0_6] : memref<1x8xf32, #tpu.memory_space<vmem>>, vector<1x8xf32>
    %cst = arith.constant 7.812500e-03 : f32
    %4 = vector.broadcast %cst : f32 to vector<1x8xf32>
    %5 = arith.mulf %0, %4 : vector<1x8xf32>
    %cst_7 = arith.constant 7.812500e-03 : f32
    %6 = vector.broadcast %cst_7 : f32 to vector<1x8xf32>
    %7 = arith.mulf %1, %6 : vector<1x8xf32>
    %8 = arith.mulf %5, %5 : vector<1x8xf32>
    %9 = arith.subf %7, %8 : vector<1x8xf32>
    %cst_8 = arith.constant 9.99999974E-6 : f32
    %10 = vector.broadcast %cst_8 : f32 to vector<1x8xf32>
    %11 = arith.addf %9, %10 : vector<1x8xf32>
    %12 = math.rsqrt %11 : vector<1x8xf32>
    %13 = arith.mulf %2, %12 : vector<1x8xf32>
    %14 = arith.mulf %5, %13 : vector<1x8xf32>
    %15 = arith.subf %3, %14 : vector<1x8xf32>
    %c0_9 = arith.constant 0 : index
    %c0_10 = arith.constant 0 : index
    %16 = vector.load %arg1[%c0_9, %c0_10] : memref<128x8xf32, #tpu.memory_space<vmem>>, vector<128x8xf32>
    %17 = vector.broadcast %13 : vector<1x8xf32> to vector<128x8xf32>
    %18 = arith.mulf %16, %17 : vector<128x8xf32>
    %19 = vector.broadcast %15 : vector<1x8xf32> to vector<128x8xf32>
    %20 = arith.addf %18, %19 : vector<128x8xf32>
    %cst_11 = arith.constant 0.000000e+00 : f32
    %21 = vector.broadcast %cst_11 : f32 to vector<128x8xf32>
    %22 = arith.maximumf %20, %21 : vector<128x8xf32>
    %c0_12 = arith.constant 0 : index
    %c0_13 = arith.constant 0 : index
    %23 = vector.load %arg6[%c0_12, %c0_13] : memref<128x8xf32, #tpu.memory_space<vmem>>, vector<128x8xf32>
    tpu.vector_store %arg6[%c0_12, %c0_13], %22 {strides = array<i32>} : memref<128x8xf32, #tpu.memory_space<vmem>>, vector<128x8xf32>,
    return
  }
  func.func @transform_0(%arg0: i32) -> (i32, i32) {
    %c0_i32 = arith.constant 0 : i32
    %c0_i32_0 = arith.constant 0 : i32
    return %arg0, %c0_i32 : i32, i32
  }
  func.func @transform_1(%arg0: i32) -> (i32, i32) {
    %c0_i32 = arith.constant 0 : i32
    %c0_i32_0 = arith.constant 0 : i32
    %c0_i32_1 = arith.constant 0 : i32
    return %c0_i32, %c0_i32_0 : i32, i32
  }
  func.func @transform_2(%arg0: i32) -> (i32, i32) {
    %c0_i32 = arith.constant 0 : i32
    %c0_i32_0 = arith.constant 0 : i32
    %c0_i32_1 = arith.constant 0 : i32
    return %c0_i32, %c0_i32_0 : i32, i32
  }
  func.func @transform_3(%arg0: i32) -> (i32, i32) {
    %c0_i32 = arith.constant 0 : i32
    %c0_i32_0 = arith.constant 0 : i32
    %c0_i32_1 = arith.constant 0 : i32
    return %c0_i32, %c0_i32_0 : i32, i32
  }
  func.func @transform_4(%arg0: i32) -> (i32, i32) {
    %c0_i32 = arith.constant 0 : i32
    %c0_i32_0 = arith.constant 0 : i32
    %c0_i32_1 = arith.constant 0 : i32
    return %c0_i32, %c0_i32_0 : i32, i32
  }
  func.func @transform_5(%arg0: i32) -> (i32, i32) {
    %c0_i32 = arith.constant 0 : i32
    %c0_i32_0 = arith.constant 0 : i32
    return %arg0, %c0_i32 : i32, i32
  }
}

module attributes {stable_mosaic.version = 11 : i64} {
  func.func @_gemm_stats_kernel(%arg0: i32, %arg1: memref<128x72xbf16, #tpu.memory_space<vmem>>, %arg2: memref<72x8xbf16, #tpu.memory_space<vmem>>, %arg3: memref<128x8xf32, #tpu.memory_space<vmem>>, %arg4: memref<1x8xf32, #tpu.memory_space<vmem>>, %arg5: memref<1x8xf32, #tpu.memory_space<vmem>>) attributes {dimension_semantics = [#tpu.dimension_semantics<arbitrary>], iteration_bounds = array<i64: 1>, scalar_prefetch = 0 : i64, scratch_operands = 0 : i64, tpu.core_type = #tpu.core_type<tc>, window_params = [{transform_indices = @transform_0, window_bounds = array<i64: 128, 72>}, {pipeline_mode = #tpu.pipeline_mode<synchronous>, transform_indices = @transform_1, window_bounds = array<i64: 72, 8>}, {transform_indices = @transform_2, window_bounds = array<i64: 128, 8>}, {pipeline_mode = #tpu.pipeline_mode<synchronous>, transform_indices = @transform_3, window_bounds = array<i64: 1, 8>}, {pipeline_mode = #tpu.pipeline_mode<synchronous>, transform_indices = @transform_4, window_bounds = array<i64: 1, 8>}]} {
    %c0 = arith.constant 0 : index
    %c0_0 = arith.constant 0 : index
    %0 = vector.load %arg1[%c0, %c0_0] : memref<128x72xbf16, #tpu.memory_space<vmem>>, vector<128x72xbf16>
    %c0_1 = arith.constant 0 : index
    %c0_2 = arith.constant 0 : index
    %1 = vector.load %arg2[%c0_1, %c0_2] : memref<72x8xbf16, #tpu.memory_space<vmem>>, vector<72x8xbf16>
    %cst = arith.constant dense<0.000000e+00> : vector<128x8xf32>
    %2 = tpu.matmul %0, %1, %cst {dimension_numbers = #tpu.dot_dimension_numbers<[1], [0], [0], [1], [0, 0, 1, 1], [], []>} : vector<128x72xbf16>, vector<72x8xbf16>, vector<128x8xf32> -> vector<128x8xf32>
    %c0_3 = arith.constant 0 : index
    %c0_4 = arith.constant 0 : index
    %3 = vector.load %arg3[%c0_3, %c0_4] : memref<128x8xf32, #tpu.memory_space<vmem>>, vector<128x8xf32>
    tpu.vector_store %arg3[%c0_3, %c0_4], %2 {strides = array<i32>} : memref<128x8xf32, #tpu.memory_space<vmem>>, vector<128x8xf32>,
    %c0_i32 = arith.constant 0 : i32
    %4 = arith.cmpi eq, %arg0, %c0_i32 : i32
    %5 = arith.extui %4 : i1 to i32
    %c0_i32_5 = arith.constant 0 : i32
    %6 = arith.cmpi ne, %5, %c0_i32_5 : i32
    scf.if %6 {
      %cst_16 = arith.constant 0.000000e+00 : f32
      %18 = vector.broadcast %cst_16 : f32 to vector<1x8xf32>
      %c0_17 = arith.constant 0 : index
      %c0_18 = arith.constant 0 : index
      %19 = vector.load %arg4[%c0_17, %c0_18] : memref<1x8xf32, #tpu.memory_space<vmem>>, vector<1x8xf32>
      tpu.vector_store %arg4[%c0_17, %c0_18], %18 {strides = array<i32>} : memref<1x8xf32, #tpu.memory_space<vmem>>, vector<1x8xf32>,
      %cst_19 = arith.constant 0.000000e+00 : f32
      %20 = vector.broadcast %cst_19 : f32 to vector<1x8xf32>
      %c0_20 = arith.constant 0 : index
      %c0_21 = arith.constant 0 : index
      %21 = vector.load %arg5[%c0_20, %c0_21] : memref<1x8xf32, #tpu.memory_space<vmem>>, vector<1x8xf32>
      tpu.vector_store %arg5[%c0_20, %c0_21], %20 {strides = array<i32>} : memref<1x8xf32, #tpu.memory_space<vmem>>, vector<1x8xf32>,
    } else {
    }
    %c0_6 = arith.constant 0 : index
    %c0_7 = arith.constant 0 : index
    %7 = vector.load %arg4[%c0_6, %c0_7] : memref<1x8xf32, #tpu.memory_space<vmem>>, vector<1x8xf32>
    %cst_8 = arith.constant dense<0.000000e+00> : vector<8xf32>
    %8 = vector.multi_reduction <add>, %2, %cst_8 [0] : vector<128x8xf32> to vector<8xf32>
    %9 = vector.shape_cast %8 : vector<8xf32> to vector<1x8xf32>
    %10 = arith.addf %7, %9 : vector<1x8xf32>
    %c0_9 = arith.constant 0 : index
    %c0_10 = arith.constant 0 : index
    %11 = vector.load %arg4[%c0_9, %c0_10] : memref<1x8xf32, #tpu.memory_space<vmem>>, vector<1x8xf32>
    tpu.vector_store %arg4[%c0_9, %c0_10], %10 {strides = array<i32>} : memref<1x8xf32, #tpu.memory_space<vmem>>, vector<1x8xf32>,
    %c0_11 = arith.constant 0 : index
    %c0_12 = arith.constant 0 : index
    %12 = vector.load %arg5[%c0_11, %c0_12] : memref<1x8xf32, #tpu.memory_space<vmem>>, vector<1x8xf32>
    %13 = arith.mulf %2, %2 : vector<128x8xf32>
    %cst_13 = arith.constant dense<0.000000e+00> : vector<8xf32>
    %14 = vector.multi_reduction <add>, %13, %cst_13 [0] : vector<128x8xf32> to vector<8xf32>
    %15 = vector.shape_cast %14 : vector<8xf32> to vector<1x8xf32>
    %16 = arith.addf %12, %15 : vector<1x8xf32>
    %c0_14 = arith.constant 0 : index
    %c0_15 = arith.constant 0 : index
    %17 = vector.load %arg5[%c0_14, %c0_15] : memref<1x8xf32, #tpu.memory_space<vmem>>, vector<1x8xf32>
    tpu.vector_store %arg5[%c0_14, %c0_15], %16 {strides = array<i32>} : memref<1x8xf32, #tpu.memory_space<vmem>>, vector<1x8xf32>,
    return
  }
  func.func @transform_0(%arg0: i32) -> (i32, i32) {
    %c0_i32 = arith.constant 0 : i32
    %c0_i32_0 = arith.constant 0 : i32
    return %arg0, %c0_i32 : i32, i32
  }
  func.func @transform_1(%arg0: i32) -> (i32, i32) {
    %c0_i32 = arith.constant 0 : i32
    %c0_i32_0 = arith.constant 0 : i32
    %c0_i32_1 = arith.constant 0 : i32
    return %c0_i32, %c0_i32_0 : i32, i32
  }
  func.func @transform_2(%arg0: i32) -> (i32, i32) {
    %c0_i32 = arith.constant 0 : i32
    %c0_i32_0 = arith.constant 0 : i32
    return %arg0, %c0_i32 : i32, i32
  }
  func.func @transform_3(%arg0: i32) -> (i32, i32) {
    %c0_i32 = arith.constant 0 : i32
    %c0_i32_0 = arith.constant 0 : i32
    %c0_i32_1 = arith.constant 0 : i32
    return %c0_i32, %c0_i32_0 : i32, i32
  }
  func.func @transform_4(%arg0: i32) -> (i32, i32) {
    %c0_i32 = arith.constant 0 : i32
    %c0_i32_0 = arith.constant 0 : i32
    %c0_i32_1 = arith.constant 0 : i32
    return %c0_i32, %c0_i32_0 : i32, i32
  }
}

module attributes {stable_mosaic.version = 11 : i64} {
  func.func @_gemm_stats_kernel(%arg0: i32, %arg1: memref<128x4xbf16, #tpu.memory_space<vmem>>, %arg2: memref<4x8xbf16, #tpu.memory_space<vmem>>, %arg3: memref<128x8xf32, #tpu.memory_space<vmem>>, %arg4: memref<1x8xf32, #tpu.memory_space<vmem>>, %arg5: memref<1x8xf32, #tpu.memory_space<vmem>>) attributes {dimension_semantics = [#tpu.dimension_semantics<arbitrary>], iteration_bounds = array<i64: 1>, scalar_prefetch = 0 : i64, scratch_operands = 0 : i64, tpu.core_type = #tpu.core_type<tc>, window_params = [{transform_indices = @transform_0, window_bounds = array<i64: 128, 4>}, {pipeline_mode = #tpu.pipeline_mode<synchronous>, transform_indices = @transform_1, window_bounds = array<i64: 4, 8>}, {transform_indices = @transform_2, window_bounds = array<i64: 128, 8>}, {pipeline_mode = #tpu.pipeline_mode<synchronous>, transform_indices = @transform_3, window_bounds = array<i64: 1, 8>}, {pipeline_mode = #tpu.pipeline_mode<synchronous>, transform_indices = @transform_4, window_bounds = array<i64: 1, 8>}]} {
    %c0 = arith.constant 0 : index
    %c0_0 = arith.constant 0 : index
    %0 = vector.load %arg1[%c0, %c0_0] : memref<128x4xbf16, #tpu.memory_space<vmem>>, vector<128x4xbf16>
    %c0_1 = arith.constant 0 : index
    %c0_2 = arith.constant 0 : index
    %1 = vector.load %arg2[%c0_1, %c0_2] : memref<4x8xbf16, #tpu.memory_space<vmem>>, vector<4x8xbf16>
    %cst = arith.constant dense<0.000000e+00> : vector<128x8xf32>
    %2 = tpu.matmul %0, %1, %cst {dimension_numbers = #tpu.dot_dimension_numbers<[1], [0], [0], [1], [0, 0, 1, 1], [], []>} : vector<128x4xbf16>, vector<4x8xbf16>, vector<128x8xf32> -> vector<128x8xf32>
    %c0_3 = arith.constant 0 : index
    %c0_4 = arith.constant 0 : index
    %3 = vector.load %arg3[%c0_3, %c0_4] : memref<128x8xf32, #tpu.memory_space<vmem>>, vector<128x8xf32>
    tpu.vector_store %arg3[%c0_3, %c0_4], %2 {strides = array<i32>} : memref<128x8xf32, #tpu.memory_space<vmem>>, vector<128x8xf32>,
    %c0_i32 = arith.constant 0 : i32
    %4 = arith.cmpi eq, %arg0, %c0_i32 : i32
    %5 = arith.extui %4 : i1 to i32
    %c0_i32_5 = arith.constant 0 : i32
    %6 = arith.cmpi ne, %5, %c0_i32_5 : i32
    scf.if %6 {
      %cst_16 = arith.constant 0.000000e+00 : f32
      %18 = vector.broadcast %cst_16 : f32 to vector<1x8xf32>
      %c0_17 = arith.constant 0 : index
      %c0_18 = arith.constant 0 : index
      %19 = vector.load %arg4[%c0_17, %c0_18] : memref<1x8xf32, #tpu.memory_space<vmem>>, vector<1x8xf32>
      tpu.vector_store %arg4[%c0_17, %c0_18], %18 {strides = array<i32>} : memref<1x8xf32, #tpu.memory_space<vmem>>, vector<1x8xf32>,
      %cst_19 = arith.constant 0.000000e+00 : f32
      %20 = vector.broadcast %cst_19 : f32 to vector<1x8xf32>
      %c0_20 = arith.constant 0 : index
      %c0_21 = arith.constant 0 : index
      %21 = vector.load %arg5[%c0_20, %c0_21] : memref<1x8xf32, #tpu.memory_space<vmem>>, vector<1x8xf32>
      tpu.vector_store %arg5[%c0_20, %c0_21], %20 {strides = array<i32>} : memref<1x8xf32, #tpu.memory_space<vmem>>, vector<1x8xf32>,
    } else {
    }
    %c0_6 = arith.constant 0 : index
    %c0_7 = arith.constant 0 : index
    %7 = vector.load %arg4[%c0_6, %c0_7] : memref<1x8xf32, #tpu.memory_space<vmem>>, vector<1x8xf32>
    %cst_8 = arith.constant dense<0.000000e+00> : vector<8xf32>
    %8 = vector.multi_reduction <add>, %2, %cst_8 [0] : vector<128x8xf32> to vector<8xf32>
    %9 = vector.shape_cast %8 : vector<8xf32> to vector<1x8xf32>
    %10 = arith.addf %7, %9 : vector<1x8xf32>
    %c0_9 = arith.constant 0 : index
    %c0_10 = arith.constant 0 : index
    %11 = vector.load %arg4[%c0_9, %c0_10] : memref<1x8xf32, #tpu.memory_space<vmem>>, vector<1x8xf32>
    tpu.vector_store %arg4[%c0_9, %c0_10], %10 {strides = array<i32>} : memref<1x8xf32, #tpu.memory_space<vmem>>, vector<1x8xf32>,
    %c0_11 = arith.constant 0 : index
    %c0_12 = arith.constant 0 : index
    %12 = vector.load %arg5[%c0_11, %c0_12] : memref<1x8xf32, #tpu.memory_space<vmem>>, vector<1x8xf32>
    %13 = arith.mulf %2, %2 : vector<128x8xf32>
    %cst_13 = arith.constant dense<0.000000e+00> : vector<8xf32>
    %14 = vector.multi_reduction <add>, %13, %cst_13 [0] : vector<128x8xf32> to vector<8xf32>
    %15 = vector.shape_cast %14 : vector<8xf32> to vector<1x8xf32>
    %16 = arith.addf %12, %15 : vector<1x8xf32>
    %c0_14 = arith.constant 0 : index
    %c0_15 = arith.constant 0 : index
    %17 = vector.load %arg5[%c0_14, %c0_15] : memref<1x8xf32, #tpu.memory_space<vmem>>, vector<1x8xf32>
    tpu.vector_store %arg5[%c0_14, %c0_15], %16 {strides = array<i32>} : memref<1x8xf32, #tpu.memory_space<vmem>>, vector<1x8xf32>,
    return
  }
  func.func @transform_0(%arg0: i32) -> (i32, i32) {
    %c0_i32 = arith.constant 0 : i32
    %c0_i32_0 = arith.constant 0 : i32
    return %arg0, %c0_i32 : i32, i32
  }
  func.func @transform_1(%arg0: i32) -> (i32, i32) {
    %c0_i32 = arith.constant 0 : i32
    %c0_i32_0 = arith.constant 0 : i32
    %c0_i32_1 = arith.constant 0 : i32
    return %c0_i32, %c0_i32_0 : i32, i32
  }
  func.func @transform_2(%arg0: i32) -> (i32, i32) {
    %c0_i32 = arith.constant 0 : i32
    %c0_i32_0 = arith.constant 0 : i32
    return %arg0, %c0_i32 : i32, i32
  }
  func.func @transform_3(%arg0: i32) -> (i32, i32) {
    %c0_i32 = arith.constant 0 : i32
    %c0_i32_0 = arith.constant 0 : i32
    %c0_i32_1 = arith.constant 0 : i32
    return %c0_i32, %c0_i32_0 : i32, i32
  }
  func.func @transform_4(%arg0: i32) -> (i32, i32) {
    %c0_i32 = arith.constant 0 : i32
    %c0_i32_0 = arith.constant 0 : i32
    %c0_i32_1 = arith.constant 0 : i32
    return %c0_i32, %c0_i32_0 : i32, i32
  }
}

module attributes {stable_mosaic.version = 11 : i64} {
  func.func @_bn_bn_add_kernel(%arg0: i32, %arg1: memref<128x8xf32, #tpu.memory_space<vmem>>, %arg2: memref<1x8xf32, #tpu.memory_space<vmem>>, %arg3: memref<1x8xf32, #tpu.memory_space<vmem>>, %arg4: memref<1x8xf32, #tpu.memory_space<vmem>>, %arg5: memref<1x8xf32, #tpu.memory_space<vmem>>, %arg6: memref<128x8xf32, #tpu.memory_space<vmem>>, %arg7: memref<1x8xf32, #tpu.memory_space<vmem>>, %arg8: memref<1x8xf32, #tpu.memory_space<vmem>>, %arg9: memref<1x8xf32, #tpu.memory_space<vmem>>, %arg10: memref<1x8xf32, #tpu.memory_space<vmem>>, %arg11: memref<128x8xf32, #tpu.memory_space<vmem>>) attributes {dimension_semantics = [#tpu.dimension_semantics<parallel>], iteration_bounds = array<i64: 1>, scalar_prefetch = 0 : i64, scratch_operands = 0 : i64, tpu.core_type = #tpu.core_type<tc>, window_params = [{transform_indices = @transform_0, window_bounds = array<i64: 128, 8>}, {pipeline_mode = #tpu.pipeline_mode<synchronous>, transform_indices = @transform_1, window_bounds = array<i64: 1, 8>}, {pipeline_mode = #tpu.pipeline_mode<synchronous>, transform_indices = @transform_2, window_bounds = array<i64: 1, 8>}, {pipeline_mode = #tpu.pipeline_mode<synchronous>, transform_indices = @transform_3, window_bounds = array<i64: 1, 8>}, {pipeline_mode = #tpu.pipeline_mode<synchronous>, transform_indices = @transform_4, window_bounds = array<i64: 1, 8>}, {transform_indices = @transform_5, window_bounds = array<i64: 128, 8>}, {pipeline_mode = #tpu.pipeline_mode<synchronous>, transform_indices = @transform_6, window_bounds = array<i64: 1, 8>}, {pipeline_mode = #tpu.pipeline_mode<synchronous>, transform_indices = @transform_7, window_bounds = array<i64: 1, 8>}, {pipeline_mode = #tpu.pipeline_mode<synchronous>, transform_indices = @transform_8, window_bounds = array<i64: 1, 8>}, {pipeline_mode = #tpu.pipeline_mode<synchronous>, transform_indices = @transform_9, window_bounds = array<i64: 1, 8>}, {transform_indices = @transform_10, window_bounds = array<i64: 128, 8>}]} {
    %c0 = arith.constant 0 : index
    %c0_0 = arith.constant 0 : index
    %0 = vector.load %arg2[%c0, %c0_0] : memref<1x8xf32, #tpu.memory_space<vmem>>, vector<1x8xf32>
    %c0_1 = arith.constant 0 : index
    %c0_2 = arith.constant 0 : index
    %1 = vector.load %arg3[%c0_1, %c0_2] : memref<1x8xf32, #tpu.memory_space<vmem>>, vector<1x8xf32>
    %c0_3 = arith.constant 0 : index
    %c0_4 = arith.constant 0 : index
    %2 = vector.load %arg4[%c0_3, %c0_4] : memref<1x8xf32, #tpu.memory_space<vmem>>, vector<1x8xf32>
    %c0_5 = arith.constant 0 : index
    %c0_6 = arith.constant 0 : index
    %3 = vector.load %arg5[%c0_5, %c0_6] : memref<1x8xf32, #tpu.memory_space<vmem>>, vector<1x8xf32>
    %cst = arith.constant 7.812500e-03 : f32
    %4 = vector.broadcast %cst : f32 to vector<1x8xf32>
    %5 = arith.mulf %0, %4 : vector<1x8xf32>
    %cst_7 = arith.constant 7.812500e-03 : f32
    %6 = vector.broadcast %cst_7 : f32 to vector<1x8xf32>
    %7 = arith.mulf %1, %6 : vector<1x8xf32>
    %8 = arith.mulf %5, %5 : vector<1x8xf32>
    %9 = arith.subf %7, %8 : vector<1x8xf32>
    %cst_8 = arith.constant 9.99999974E-6 : f32
    %10 = vector.broadcast %cst_8 : f32 to vector<1x8xf32>
    %11 = arith.addf %9, %10 : vector<1x8xf32>
    %12 = math.rsqrt %11 : vector<1x8xf32>
    %13 = arith.mulf %2, %12 : vector<1x8xf32>
    %14 = arith.mulf %5, %13 : vector<1x8xf32>
    %15 = arith.subf %3, %14 : vector<1x8xf32>
    %c0_9 = arith.constant 0 : index
    %c0_10 = arith.constant 0 : index
    %16 = vector.load %arg7[%c0_9, %c0_10] : memref<1x8xf32, #tpu.memory_space<vmem>>, vector<1x8xf32>
    %c0_11 = arith.constant 0 : index
    %c0_12 = arith.constant 0 : index
    %17 = vector.load %arg8[%c0_11, %c0_12] : memref<1x8xf32, #tpu.memory_space<vmem>>, vector<1x8xf32>
    %c0_13 = arith.constant 0 : index
    %c0_14 = arith.constant 0 : index
    %18 = vector.load %arg9[%c0_13, %c0_14] : memref<1x8xf32, #tpu.memory_space<vmem>>, vector<1x8xf32>
    %c0_15 = arith.constant 0 : index
    %c0_16 = arith.constant 0 : index
    %19 = vector.load %arg10[%c0_15, %c0_16] : memref<1x8xf32, #tpu.memory_space<vmem>>, vector<1x8xf32>
    %cst_17 = arith.constant 7.812500e-03 : f32
    %20 = vector.broadcast %cst_17 : f32 to vector<1x8xf32>
    %21 = arith.mulf %16, %20 : vector<1x8xf32>
    %cst_18 = arith.constant 7.812500e-03 : f32
    %22 = vector.broadcast %cst_18 : f32 to vector<1x8xf32>
    %23 = arith.mulf %17, %22 : vector<1x8xf32>
    %24 = arith.mulf %21, %21 : vector<1x8xf32>
    %25 = arith.subf %23, %24 : vector<1x8xf32>
    %cst_19 = arith.constant 9.99999974E-6 : f32
    %26 = vector.broadcast %cst_19 : f32 to vector<1x8xf32>
    %27 = arith.addf %25, %26 : vector<1x8xf32>
    %28 = math.rsqrt %27 : vector<1x8xf32>
    %29 = arith.mulf %18, %28 : vector<1x8xf32>
    %30 = arith.mulf %21, %29 : vector<1x8xf32>
    %31 = arith.subf %19, %30 : vector<1x8xf32>
    %c0_20 = arith.constant 0 : index
    %c0_21 = arith.constant 0 : index
    %32 = vector.load %arg1[%c0_20, %c0_21] : memref<128x8xf32, #tpu.memory_space<vmem>>, vector<128x8xf32>
    %33 = vector.broadcast %13 : vector<1x8xf32> to vector<128x8xf32>
    %34 = arith.mulf %32, %33 : vector<128x8xf32>
    %35 = vector.broadcast %15 : vector<1x8xf32> to vector<128x8xf32>
    %36 = arith.addf %34, %35 : vector<128x8xf32>
    %c0_22 = arith.constant 0 : index
    %c0_23 = arith.constant 0 : index
    %37 = vector.load %arg6[%c0_22, %c0_23] : memref<128x8xf32, #tpu.memory_space<vmem>>, vector<128x8xf32>
    %38 = vector.broadcast %29 : vector<1x8xf32> to vector<128x8xf32>
    %39 = arith.mulf %37, %38 : vector<128x8xf32>
    %40 = vector.broadcast %31 : vector<1x8xf32> to vector<128x8xf32>
    %41 = arith.addf %39, %40 : vector<128x8xf32>
    %42 = arith.addf %36, %41 : vector<128x8xf32>
    %cst_24 = arith.constant 0.000000e+00 : f32
    %43 = vector.broadcast %cst_24 : f32 to vector<128x8xf32>
    %44 = arith.maximumf %42, %43 : vector<128x8xf32>
    %c0_25 = arith.constant 0 : index
    %c0_26 = arith.constant 0 : index
    %45 = vector.load %arg11[%c0_25, %c0_26] : memref<128x8xf32, #tpu.memory_space<vmem>>, vector<128x8xf32>
    tpu.vector_store %arg11[%c0_25, %c0_26], %44 {strides = array<i32>} : memref<128x8xf32, #tpu.memory_space<vmem>>, vector<128x8xf32>,
    return
  }
  func.func @transform_0(%arg0: i32) -> (i32, i32) {
    %c0_i32 = arith.constant 0 : i32
    %c0_i32_0 = arith.constant 0 : i32
    return %arg0, %c0_i32 : i32, i32
  }
  func.func @transform_1(%arg0: i32) -> (i32, i32) {
    %c0_i32 = arith.constant 0 : i32
    %c0_i32_0 = arith.constant 0 : i32
    %c0_i32_1 = arith.constant 0 : i32
    return %c0_i32, %c0_i32_0 : i32, i32
  }
  func.func @transform_2(%arg0: i32) -> (i32, i32) {
    %c0_i32 = arith.constant 0 : i32
    %c0_i32_0 = arith.constant 0 : i32
    %c0_i32_1 = arith.constant 0 : i32
    return %c0_i32, %c0_i32_0 : i32, i32
  }
  func.func @transform_3(%arg0: i32) -> (i32, i32) {
    %c0_i32 = arith.constant 0 : i32
    %c0_i32_0 = arith.constant 0 : i32
    %c0_i32_1 = arith.constant 0 : i32
    return %c0_i32, %c0_i32_0 : i32, i32
  }
  func.func @transform_4(%arg0: i32) -> (i32, i32) {
    %c0_i32 = arith.constant 0 : i32
    %c0_i32_0 = arith.constant 0 : i32
    %c0_i32_1 = arith.constant 0 : i32
    return %c0_i32, %c0_i32_0 : i32, i32
  }
  func.func @transform_5(%arg0: i32) -> (i32, i32) {
    %c0_i32 = arith.constant 0 : i32
    %c0_i32_0 = arith.constant 0 : i32
    return %arg0, %c0_i32 : i32, i32
  }
  func.func @transform_6(%arg0: i32) -> (i32, i32) {
    %c0_i32 = arith.constant 0 : i32
    %c0_i32_0 = arith.constant 0 : i32
    %c0_i32_1 = arith.constant 0 : i32
    return %c0_i32, %c0_i32_0 : i32, i32
  }
  func.func @transform_7(%arg0: i32) -> (i32, i32) {
    %c0_i32 = arith.constant 0 : i32
    %c0_i32_0 = arith.constant 0 : i32
    %c0_i32_1 = arith.constant 0 : i32
    return %c0_i32, %c0_i32_0 : i32, i32
  }
  func.func @transform_8(%arg0: i32) -> (i32, i32) {
    %c0_i32 = arith.constant 0 : i32
    %c0_i32_0 = arith.constant 0 : i32
    %c0_i32_1 = arith.constant 0 : i32
    return %c0_i32, %c0_i32_0 : i32, i32
  }
  func.func @transform_9(%arg0: i32) -> (i32, i32) {
    %c0_i32 = arith.constant 0 : i32
    %c0_i32_0 = arith.constant 0 : i32
    %c0_i32_1 = arith.constant 0 : i32
    return %c0_i32, %c0_i32_0 : i32, i32
  }
  func.func @transform_10(%arg0: i32) -> (i32, i32) {
    %c0_i32 = arith.constant 0 : i32
    %c0_i32_0 = arith.constant 0 : i32
    return %arg0, %c0_i32 : i32, i32
  }
}

</mosaic_0001>

<bundles_post_ra>
// kernel: basic_block_forward.6
= control target key start
LH: loop header
LB: loop body
LE: loop exit
PB: predicated region body
PF: predicated region fallthrough
CT: control target
= control target key end

     0   :  { %v50_v7 = vlaneseq  ;;  %vm109_vm0 = vcmask 64512   ;;  %s286_s1 = inlined_call_operand.vmem [shape: f32[1,8], index: 1, kind: input, shape index: {}]   ;;  %s287_s2 = inlined_call_operand.vmem [shape: f32[1,8], index: 2, kind: input, shape index: {}]   ;;  %s288_s3 = inlined_call_operand.vmem [shape: f32[1,8], index: 3, kind: input, shape index: {}]   ;;  %s289_s0 = inlined_call_operand.vmem [shape: f32[128,8], index: 0, kind: input, shape index: {}]   ;;  %s290_s4 = inlined_call_operand.vmem [shape: f32[1,8], index: 4, kind: input, shape index: {}]   ;;  %s291_s5 = inlined_call_operand.vmem [shape: f32[128,8], index: 5, kind: output, shape index: {}]  }
   0x1   :  { %v20_v0 = vld [vmem:[%s286_s1] sm:$0x1]  ;;  %v34_v15 = vld [vmem:[%s289_s0 + $0x8] sm:$0xff]  ;;  %v35_v16 = vld [vmem:[%s289_s0 + $0x10] sm:$0xff] }
   0x2   :  { %v21_v1 = vld [vmem:[%s287_s2] sm:$0x1]  ;;  %v24_v2 = vmul.f32 0.0078125, %v20_v0  ;;  %v51_v8 = vshrl.u32 %v50_v7, 7  ;;  %v36_v17 = vld [vmem:[%s289_s0 + $0x18] sm:$0xff]  ;;  %v38_v21 = vld [vmem:[%s289_s0 + $0x28] sm:$0xff] }
   0x3   :  { %v25_v3 = vmul.f32 0.0078125, %v21_v1  ;;  %v22_v9 = vld [vmem:[%s288_s3] sm:$0x1]  ;;  %v39_v22 = vld [vmem:[%s289_s0 + $0x30] sm:$0xff]  ;;  %v40_v23 = vld [vmem:[%s289_s0 + $0x38] sm:$0xff] }
   0x4   :  { %v26_v4 = vmul.f32 %v24_v2, %v24_v2  ;;  %v52_v10 = vsub.s32 0, %v51_v8  ;;  %v23_v12 = vld [vmem:[%s290_s4] sm:$0x1]  ;;  %v42_v25 = vld [vmem:[%s289_s0 + $0x48] sm:$0xff]  ;;  %v43_v26 = vld [vmem:[%s289_s0 + $0x50] sm:$0xff] }
   0x5   :  { %v33_v14 = vld [vmem:[%s289_s0] sm:$0xff]  ;;  %v44_v31 = vld [vmem:[%s289_s0 + $0x58] sm:$0xff]  ;;  %v46_v33 = vld [vmem:[%s289_s0 + $0x68] sm:$0xff] }
   0x6   :  { %v27_v5 = vsub.f32 %v25_v3, %v26_v4  ;;  %v37_v18 = vld [vmem:[%s289_s0 + $0x20] sm:$0xff]  ;;  %v47_v58 = vld [vmem:[%s289_s0 + $0x70] sm:$0xff]  ;;  %v48_v59 = vld [vmem:[%s289_s0 + $0x78] sm:$0xff] }
   0x7   :  { %v41_v24 = vld [vmem:[%s289_s0 + $0x40] sm:$0xff] }
   0x8   :  { %v28_v6 = vadd.f32 1e-05, %v27_v5  ;;  %v45_v32 = vld [vmem:[%s289_s0 + $0x60] sm:$0xff] }
   0xa   :  { %130 = vrsqrt.f32 %v28_v6 }
  0x14   :  { %v131_v11 = vpop.eup %130 }
  0x15   :  { %v30_v13 = vmul.f32 %v131_v11, %v22_v9 }
  0x17   :  { %v31_v19 = vmul.f32 %v30_v13, %v24_v2  ;;  %v53_v20 = vrot.slane %v30_v13, %v52_v10 }
  0x19   :  { %v32_v27 = vsub.f32 %v23_v12, %v31_v19  ;;  %v55_v28 = vmul.f32 %v53_v20, %v33_v14  ;;  %v56_v29 = vmul.f32 %v53_v20, %v34_v15  ;;  %v57_v30 = vmul.f32 %v53_v20, %v35_v16 }
  0x1a   :  { %v58_v34 = vmul.f32 %v53_v20, %v36_v17  ;;  %v59_v35 = vmul.f32 %v53_v20, %v37_v18  ;;  %v60_v36 = vmul.f32 %v53_v20, %v38_v21  ;;  %v61_v37 = vmul.f32 %v53_v20, %v39_v22 }
  0x1b   :  { %v75_v38 = vrot.slane %v32_v27, %v52_v10  ;;  %v62_v39 = vmul.f32 %v53_v20, %v40_v23  ;;  %v63_v40 = vmul.f32 %v53_v20, %v41_v24  ;;  %v64_v41 = vmul.f32 %v53_v20, %v42_v25 }
  0x1c   :  { %v65_v42 = vmul.f32 %v53_v20, %v43_v26  ;;  %v66_v43 = vmul.f32 %v53_v20, %v44_v31  ;;  %v67_v44 = vmul.f32 %v53_v20, %v45_v32  ;;  %v68_v45 = vmul.f32 %v53_v20, %v46_v33 }
  0x1d   :  { %v77_v46 = vadd.f32 %v75_v38, %v55_v28  ;;  %v78_v47 = vadd.f32 %v75_v38, %v56_v29  ;;  %v79_v48 = vadd.f32 %v75_v38, %v57_v30  ;;  %v80_v49 = vadd.f32 %v75_v38, %v58_v34 }
  0x1e   :  { %v81_v50 = vadd.f32 %v75_v38, %v59_v35  ;;  %v82_v51 = vadd.f32 %v75_v38, %v60_v36  ;;  %v83_v52 = vadd.f32 %v75_v38, %v61_v37  ;;  %v84_v53 = vadd.f32 %v75_v38, %v62_v39 }
  0x1f   :  { %v93_v54 = vmax.f32 %v77_v46, 0.0  ;;  %v94_v55 = vmax.f32 %v78_v47, 0.0  ;;  %v95_v56 = vmax.f32 %v79_v48, 0.0  ;;  %v96_v57 = vmax.f32 %v80_v49, 0.0 }
  0x20   :  { %v97_v60 = vmax.f32 %v81_v50, 0.0  ;;  %v98_v61 = vmax.f32 %v82_v51, 0.0  ;;  %v99_v62 = vmax.f32 %v83_v52, 0.0  ;;  %v100_v63 = vmax.f32 %v84_v53, 0.0 }
  0x21   :  { %110 = vst.msk [vmem:[%s291_s5] sm:$0xff] %vm109_vm0, %v93_v54  ;;  %111 = vst.msk [vmem:[%s291_s5 + $0x8] sm:$0xff] %vm109_vm0, %v94_v55  ;;  %v85_v0 = vadd.f32 %v75_v38, %v63_v40  ;;  %v86_v1 = vadd.f32 %v75_v38, %v64_v41  ;;  %v87_v2 = vadd.f32 %v75_v38, %v65_v42 }
  0x22   :  { %112 = vst.msk [vmem:[%s291_s5 + $0x10] sm:$0xff] %vm109_vm0, %v95_v56  ;;  %113 = vst.msk [vmem:[%s291_s5 + $0x18] sm:$0xff] %vm109_vm0, %v96_v57  ;;  %v88_v3 = vadd.f32 %v75_v38, %v66_v43  ;;  %v89_v4 = vadd.f32 %v75_v38, %v67_v44  ;;  %v90_v5 = vadd.f32 %v75_v38, %v68_v45 }
  0x23   :  { %114 = vst.msk [vmem:[%s291_s5 + $0x20] sm:$0xff] %vm109_vm0, %v97_v60  ;;  %115 = vst.msk [vmem:[%s291_s5 + $0x28] sm:$0xff] %vm109_vm0, %v98_v61  ;;  %v69_v6 = vmul.f32 %v53_v20, %v47_v58  ;;  %v70_v7 = vmul.f32 %v53_v20, %v48_v59  ;;  %v101_v8 = vmax.f32 %v85_v0, 0.0  ;;  %v102_v9 = vmax.f32 %v86_v1, 0.0 }
  0x24   :  { %116 = vst.msk [vmem:[%s291_s5 + $0x30] sm:$0xff] %vm109_vm0, %v99_v62  ;;  %117 = vst.msk [vmem:[%s291_s5 + $0x38] sm:$0xff] %vm109_vm0, %v100_v63  ;;  %v103_v10 = vmax.f32 %v87_v2, 0.0  ;;  %v104_v11 = vmax.f32 %v88_v3, 0.0  ;;  %v105_v12 = vmax.f32 %v89_v4, 0.0  ;;  %v106_v13 = vmax.f32 %v90_v5, 0.0 }
  0x25   :  { %v91_v14 = vadd.f32 %v75_v38, %v69_v6  ;;  %v92_v15 = vadd.f32 %v75_v38, %v70_v7  ;;  %118 = vst.msk [vmem:[%s291_s5 + $0x40] sm:$0xff] %vm109_vm0, %v101_v8  ;;  %119 = vst.msk [vmem:[%s291_s5 + $0x48] sm:$0xff] %vm109_vm0, %v102_v9 }
  0x26   :  { %120 = vst.msk [vmem:[%s291_s5 + $0x50] sm:$0xff] %vm109_vm0, %v103_v10  ;;  %121 = vst.msk [vmem:[%s291_s5 + $0x58] sm:$0xff] %vm109_vm0, %v104_v11 }
  0x27   :  { %122 = vst.msk [vmem:[%s291_s5 + $0x60] sm:$0xff] %vm109_vm0, %v105_v12  ;;  %123 = vst.msk [vmem:[%s291_s5 + $0x68] sm:$0xff] %vm109_vm0, %v106_v13  ;;  %v107_v16 = vmax.f32 %v91_v14, 0.0  ;;  %v108_v17 = vmax.f32 %v92_v15, 0.0 }
  0x29   :  { %124 = vst.msk [vmem:[%s291_s5 + $0x70] sm:$0xff] %vm109_vm0, %v107_v16  ;;  %125 = vst.msk [vmem:[%s291_s5 + $0x78] sm:$0xff] %vm109_vm0, %v108_v17 }

// kernel: basic_block_forward.5
= control target key start
LH: loop header
LB: loop body
LE: loop exit
PB: predicated region body
PF: predicated region fallthrough
CT: control target
= control target key end

     0   :  { %vm91_vm0 = vcmask 293888   ;;  %vm116_vm1 = vcmask 1041408   ;;  %vm238_vm2 = vcmask 57344   ;;  %v422_v12 = vmov 0.0   ;;  %s625_s1 = inlined_call_operand.vmem [shape: bf16[36,8], index: 1, kind: input, shape index: {}]   ;;  %s626_s0 = inlined_call_operand.vmem [shape: bf16[128,36], index: 0, kind: input, shape index: {}]   ;;  %s627_s3 = inlined_call_operand.vmem [shape: f32[1,8], index: 3, kind: output, shape index: {1}]   ;;  %s628_s4 = inlined_call_operand.vmem [shape: f32[1,8], index: 4, kind: output, shape index: {2}]   ;;  %s629_s2 = inlined_call_operand.vmem [shape: f32[128,8], index: 2, kind: output, shape index: {0}]  }
   0x1   :  { %v411_v0 = vld [vmem:[%s625_s1] sm:$0xff]   ;;  %v412_v1 = vld [vmem:[%s625_s1 + $0x8] sm:$0xff]   ;;  %v413_v2 = vld [vmem:[%s625_s1 + $0x10] ss:$0 sps:$4 sm:$0x33]   ;;  %vm217_vm3 = vcmask 64512  }
   0x2   :  { %380 = vmatprep.subr.bf16.mxu0 %v411_v0  ;;  %v414_v3 = vld [vmem:[%s626_s0] sm:$0xff]   ;;  %402 = vmatprep.subr.bf16.mxu1 %v411_v0  ;;  %v118_v5 = vsel %vm116_vm1, %v413_v2, 0  ;;  %v415_v6 = vld [vmem:[%s626_s0 + $0x8] sm:$0xff]   ;;  %v416_v8 = vld [vmem:[%s626_s0 + $0x10] sm:$0xff]   ;;  %239 = vst.msk [vmem:[%s627_s3] sm:$0x1] %vm238_vm2, %v422_v12 }
   0x3   :  { %381 = vmatpush3.bf16.msra.mxu0 %v411_v0  ;;  %405 = vmatpush3.bf16.msra.mxu1 %v411_v0  ;;  %v418_v4 = vld [vmem:[%s626_s0 + $0x20] sm:$0xff]   ;;  %v419_v7 = vld [vmem:[%s626_s0 + $0x28] sm:$0xff]   ;;  %v420_v9 = vld [vmem:[%s626_s0 + $0x30] sm:$0xff]   ;;  %240 = vst.msk [vmem:[%s628_s4] sm:$0x1] %vm238_vm2, %v422_v12 }
   0x4   :  { %382 = vmatprep.subr.bf16.mxu0 %v412_v1  ;;  %386 = vmatprep.mubr.msk.bf16.mxu0 %vm91_vm0, %v414_v3  ;;  %v417_v10 = vld [vmem:[%s626_s0 + $0x18] sm:$0xff]  }
   0x5   :  { %403 = vmatprep.subr.bf16.mxu1 %v412_v1  ;;  %394 = vmatprep.mubr.msk.bf16.mxu1 %vm91_vm0, %v418_v4  ;;  %v421_v11 = vld [vmem:[%s626_s0 + $0x38] sm:$0xff]  }
   0x7   :  { %383 = vmatpush3.bf16.msra.mxu0 %v412_v1  ;;  %406 = vmatpush3.bf16.msra.mxu1 %v412_v1 }
   0x8   :  { %408 = vmatprep.subr.msk.bf16.mxu0 %vm116_vm1, %v413_v2  ;;  %409 = vmatprep.subr.msk.bf16.mxu1 %vm116_vm1, %v413_v2 }
   0xb   :  { %385 = vmatpush3.bf16.msra.mxu0 %v118_v5  ;;  %407 = vmatpush3.bf16.msra.mxu1 %v118_v5 }
   0xe   :  { %387 = vmatmul.mubr.msk.bf16.vlgmr.msra.gmra.mrb[0].mxu0 %vm91_vm0, %v415_v6  ;;  %395 = vmatmul.mubr.msk.bf16.vlgmr.msra.gmra.mrb[0].mxu1 %vm91_vm0, %v419_v7 }
   0xf   :  { %390 = vmatprep.mubr.msk.bf16.mxu0 %vm91_vm0, %v416_v8  ;;  %398 = vmatprep.mubr.msk.bf16.mxu1 %vm91_vm0, %v420_v9 }
  0x16   :  { %391 = vmatmul.mubr.msk.bf16.gmra.mrb[4].mxu0 %vm91_vm0, %v417_v10  ;;  %399 = vmatmul.mubr.msk.bf16.gmra.mrb[4].mxu1 %vm91_vm0, %v421_v11 }
  0xe1   :  { %v388_v13 = vpop.f32.mrb[0].mxu0  ;;  %v497_v14 = vpop.f32.mrb[0].mxu1 }
  0xe2   :  { %220 = vst.msk [vmem:[%s629_s2 + $0x10] sm:$0xff] %vm217_vm3, %v388_v13  ;;  %v154_v15 = vpop.f32.mrb[1].mxu0  ;;  %228 = vst.msk [vmem:[%s629_s2 + $0x50] sm:$0xff] %vm217_vm3, %v497_v14  ;;  %v186_v16 = vpop.f32.mrb[1].mxu1  ;;  %v285_v22 = vmul.f32 %v388_v13, %v388_v13  ;;  %v245_v27 = vsel %vm217_vm3, %v388_v13, 0.0  ;;  %v293_v8 = vmul.f32 %v497_v14, %v497_v14  ;;  %v261_v12 = vsel %vm217_vm3, %v497_v14, 0.0 }
  0xe3   :  { %218 = vst.msk [vmem:[%s629_s2] sm:$0xff] %vm217_vm3, %v154_v15  ;;  %v283_v17 = vmul.f32 %v154_v15, %v154_v15  ;;  %v389_v18 = vpop.f32.mrb[2].mxu0  ;;  %226 = vst.msk [vmem:[%s629_s2 + $0x40] sm:$0xff] %vm217_vm3, %v186_v16  ;;  %v516_v19 = vpop.f32.mrb[2].mxu1  ;;  %v242_v23 = vsel %vm217_vm3, %v154_v15, 0.0  ;;  %v291_v59 = vmul.f32 %v186_v16, %v186_v16  ;;  %v257_v0 = vsel %vm217_vm3, %v186_v16, 0.0 }
  0xe4   :  { %221 = vst.msk [vmem:[%s629_s2 + $0x18] sm:$0xff] %vm217_vm3, %v389_v18  ;;  %v157_v20 = vpop.f32.mrb[3].mxu0  ;;  %229 = vst.msk [vmem:[%s629_s2 + $0x58] sm:$0xff] %vm217_vm3, %v516_v19  ;;  %v189_v21 = vpop.f32.mrb[3].mxu1  ;;  %v286_v29 = vmul.f32 %v389_v18, %v389_v18  ;;  %v302_v33 = vsel %vm217_vm3, %v285_v22, 0.0  ;;  %v247_v34 = vsel %vm217_vm3, %v389_v18, 0.0  ;;  %v294_v13 = vmul.f32 %v516_v19, %v516_v19 }
  0xe5   :  { %219 = vst.msk [vmem:[%s629_s2 + $0x8] sm:$0xff] %vm217_vm3, %v157_v20  ;;  %v243_v24 = vsel %vm217_vm3, %v157_v20, 0.0  ;;  %v284_v25 = vmul.f32 %v157_v20, %v157_v20  ;;  %227 = vst.msk [vmem:[%s629_s2 + $0x48] sm:$0xff] %vm217_vm3, %v189_v21  ;;  %v299_v28 = vsel %vm217_vm3, %v283_v17, 0.0  ;;  %v314_v4 = vsel %vm217_vm3, %v291_v59, 0.0 }
  0xe6   :  { %v244_v26 = vadd.f32 %v243_v24, %v242_v23  ;;  %v304_v41 = vsel %vm217_vm3, %v286_v29, 0.0  ;;  %v292_v5 = vmul.f32 %v189_v21, %v189_v21  ;;  %v259_v9 = vsel %vm217_vm3, %v189_v21, 0.0 }
  0xe7   :  { %v300_v30 = vsel %vm217_vm3, %v284_v25, 0.0  ;;  %v318_v20 = vsel %vm217_vm3, %v293_v8, 0.0  ;;  %v263_v22 = vsel %vm217_vm3, %v516_v19, 0.0  ;;  %v320_v25 = vsel %vm217_vm3, %v294_v13, 0.0 }
  0xe8   :  { %v246_v31 = vadd.f32 %v245_v27, %v244_v26  ;;  %v301_v32 = vadd.f32 %v300_v30, %v299_v28  ;;  %v316_v15 = vsel %vm217_vm3, %v292_v5, 0.0 }
  0xe9   :  { %v392_v35 = vpop.f32.mrb[4].mxu0  ;;  %v542_v36 = vpop.f32.mrb[4].mxu1 }
  0xea   :  { %v303_v37 = vadd.f32 %v302_v33, %v301_v32  ;;  %224 = vst.msk [vmem:[%s629_s2 + $0x30] sm:$0xff] %vm217_vm3, %v392_v35  ;;  %v170_v38 = vpop.f32.mrb[5].mxu0  ;;  %v248_v39 = vadd.f32 %v247_v34, %v246_v31  ;;  %232 = vst.msk [vmem:[%s629_s2 + $0x70] sm:$0xff] %vm217_vm3, %v542_v36  ;;  %v202_v40 = vpop.f32.mrb[5].mxu1  ;;  %v289_v50 = vmul.f32 %v392_v35, %v392_v35  ;;  %v253_v56 = vsel %vm217_vm3, %v392_v35, 0.0 }
  0xeb   :  { %222 = vst.msk [vmem:[%s629_s2 + $0x20] sm:$0xff] %vm217_vm3, %v170_v38  ;;  %v249_v42 = vsel %vm217_vm3, %v170_v38, 0.0  ;;  %v287_v43 = vmul.f32 %v170_v38, %v170_v38  ;;  %v393_v44 = vpop.f32.mrb[6].mxu0  ;;  %230 = vst.msk [vmem:[%s629_s2 + $0x60] sm:$0xff] %vm217_vm3, %v202_v40  ;;  %v401_v45 = vpop.f32.mrb[6].mxu1  ;;  %v295_v16 = vmul.f32 %v202_v40, %v202_v40  ;;  %v265_v21 = vsel %vm217_vm3, %v202_v40, 0.0 }
  0xec   :  { %v250_v46 = vadd.f32 %v249_v42, %v248_v39  ;;  %v305_v47 = vadd.f32 %v304_v41, %v303_v37  ;;  %225 = vst.msk [vmem:[%s629_s2 + $0x38] sm:$0xff] %vm217_vm3, %v393_v44  ;;  %v173_v48 = vpop.f32.mrb[7].mxu0  ;;  %233 = vst.msk [vmem:[%s629_s2 + $0x78] sm:$0xff] %vm217_vm3, %v401_v45  ;;  %v205_v49 = vpop.f32.mrb[7].mxu1  ;;  %v290_v57 = vmul.f32 %v393_v44, %v393_v44  ;;  %v310_v62 = vsel %vm217_vm3, %v289_v50, 0.0 }
  0xed   :  { %v306_v51 = vsel %vm217_vm3, %v287_v43, 0.0  ;;  %223 = vst.msk [vmem:[%s629_s2 + $0x28] sm:$0xff] %vm217_vm3, %v173_v48  ;;  %v251_v52 = vsel %vm217_vm3, %v173_v48, 0.0  ;;  %v288_v53 = vmul.f32 %v173_v48, %v173_v48  ;;  %231 = vst.msk [vmem:[%s629_s2 + $0x68] sm:$0xff] %vm217_vm3, %v205_v49  ;;  %v255_v63 = vsel %vm217_vm3, %v393_v44, 0.0 }
  0xee   :  { %v307_v54 = vadd.f32 %v306_v51, %v305_v47  ;;  %v252_v55 = vadd.f32 %v251_v52, %v250_v46  ;;  %v312_v3 = vsel %vm217_vm3, %v290_v57, 0.0  ;;  %v322_v14 = vsel %vm217_vm3, %v295_v16, 0.0 }
  0xef   :  { %v308_v58 = vsel %vm217_vm3, %v288_v53, 0.0  ;;  %v296_v26 = vmul.f32 %v205_v49, %v205_v49  ;;  %v297_v29 = vmul.f32 %v542_v36, %v542_v36  ;;  %v267_v30 = vsel %vm217_vm3, %v205_v49, 0.0  ;;  %v241_v53 = vld [vmem:[%s627_s3] sm:$0x1] }
  0xf0   :  { %v254_v60 = vadd.f32 %v253_v56, %v252_v55  ;;  %v309_v61 = vadd.f32 %v308_v58, %v307_v54  ;;  %v269_v19 = vsel %vm217_vm3, %v542_v36, 0.0  ;;  %v298_v33 = vmul.f32 %v401_v45, %v401_v45  ;;  %v282_v55 = vld [vmem:[%s628_s4] sm:$0x1] }
  0xf1   :  { %v324_v34 = vsel %vm217_vm3, %v296_v26, 0.0  ;;  %v326_v38 = vsel %vm217_vm3, %v297_v29, 0.0  ;;  %v271_v39 = vsel %vm217_vm3, %v401_v45, 0.0 }
  0xf2   :  { %v311_v1 = vadd.f32 %v310_v62, %v309_v61  ;;  %v256_v2 = vadd.f32 %v255_v63, %v254_v60  ;;  %v328_v42 = vsel %vm217_vm3, %v298_v33, 0.0 }
  0xf4   :  { %v258_v6 = vadd.f32 %v257_v0, %v256_v2  ;;  %v313_v7 = vadd.f32 %v312_v3, %v311_v1 }
  0xf6   :  { %v315_v10 = vadd.f32 %v314_v4, %v313_v7  ;;  %v260_v11 = vadd.f32 %v259_v9, %v258_v6 }
  0xf8   :  { %v262_v17 = vadd.f32 %v261_v12, %v260_v11  ;;  %v317_v18 = vadd.f32 %v316_v15, %v315_v10 }
  0xfa   :  { %v319_v23 = vadd.f32 %v318_v20, %v317_v18  ;;  %v264_v24 = vadd.f32 %v263_v22, %v262_v17 }
  0xfc   :  { %v266_v27 = vadd.f32 %v265_v21, %v264_v24  ;;  %v321_v28 = vadd.f32 %v320_v25, %v319_v23 }
  0xfe   :  { %v323_v31 = vadd.f32 %v322_v14, %v321_v28  ;;  %v268_v32 = vadd.f32 %v267_v30, %v266_v27 }
 0x100   :  { %v270_v35 = vadd.f32 %v269_v19, %v268_v32  ;;  %v325_v37 = vadd.f32 %v324_v34, %v323_v31 }
 0x102   :  { %v272_v40 = vadd.f32 %v271_v39, %v270_v35  ;;  %v327_v41 = vadd.f32 %v326_v38, %v325_v37 }
 0x104   :  { %v273_v43 = vrot.slane %v272_v40, 4  ;;  %v329_v44 = vadd.f32 %v328_v42, %v327_v41 }
 0x106   :  { %v274_v46 = vadd.f32 %v273_v43, %v272_v40  ;;  %v330_v47 = vrot.slane %v329_v44, 4 }
 0x108   :  { %v275_v48 = vrot.slane %v274_v46, 2  ;;  %v331_v49 = vadd.f32 %v330_v47, %v329_v44 }
 0x10a   :  { %v276_v36 = vadd.f32 %v275_v48, %v274_v46  ;;  %v332_v50 = vrot.slane %v331_v49, 2 }
 0x10c   :  { %v277_v51 = vrot.slane %v276_v36, 1  ;;  %v333_v52 = vadd.f32 %v332_v50, %v331_v49 }
 0x10e   :  { %v278_v54 = vadd.f32 %v277_v51, %v276_v36  ;;  %v334_v45 = vrot.slane %v333_v52, 1 }
 0x110   :  { %v279_v56 = vadd.f32 %v278_v54, %v241_v53  ;;  %v335_v57 = vadd.f32 %v334_v45, %v333_v52 }
 0x112   :  { %281 = vst.msk [vmem:[%s627_s3] sm:$0x1] %vm238_vm2, %v279_v56  ;;  %v336_v58 = vadd.f32 %v335_v57, %v282_v55 }
 0x114   :  { %337 = vst.msk [vmem:[%s628_s4] sm:$0x1] %vm238_vm2, %v336_v58 }

// kernel: basic_block_forward.7
= control target key start
LH: loop header
LB: loop body
LE: loop exit
PB: predicated region body
PF: predicated region fallthrough
CT: control target
= control target key end

     0   :  { %vm107_vm0 = vcmask 588800   ;;  %vm132_vm1 = vcmask 1043456   ;;  %vm254_vm2 = vcmask 57344   ;;  %v452_v14 = vmov 0.0   ;;  %s661_s1 = inlined_call_operand.vmem [shape: bf16[72,8], index: 1, kind: input, shape index: {}]   ;;  %s662_s0 = inlined_call_operand.vmem [shape: bf16[128,72], index: 0, kind: input, shape index: {}]   ;;  %s663_s3 = inlined_call_operand.vmem [shape: f32[1,8], index: 3, kind: output, shape index: {1}]   ;;  %s664_s4 = inlined_call_operand.vmem [shape: f32[1,8], index: 4, kind: output, shape index: {2}]   ;;  %s665_s2 = inlined_call_operand.vmem [shape: f32[128,8], index: 2, kind: output, shape index: {0}]  }
   0x1   :  { %v439_v0 = vld [vmem:[%s661_s1] sm:$0xff]   ;;  %v440_v1 = vld [vmem:[%s661_s1 + $0x8] sm:$0xff]   ;;  %v441_v2 = vld [vmem:[%s661_s1 + $0x10] sm:$0xff]   ;;  %255 = vst.msk [vmem:[%s663_s3] sm:$0x1] %vm254_vm2, %v452_v14  ;;  %vm233_vm3 = vcmask 64512  }
   0x2   :  { %400 = vmatprep.subr.bf16.mxu0 %v439_v0  ;;  %426 = vmatprep.subr.bf16.mxu1 %v439_v0  ;;  %v444_v3 = vld [vmem:[%s662_s0] sm:$0xff]   ;;  %v442_v4 = vld [vmem:[%s661_s1 + $0x18] sm:$0xff]   ;;  %v445_v8 = vld [vmem:[%s662_s0 + $0x8] sm:$0xff]   ;;  %256 = vst.msk [vmem:[%s664_s4] sm:$0x1] %vm254_vm2, %v452_v14 }
   0x3   :  { %401 = vmatpush3.bf16.msra.mxu0 %v439_v0  ;;  %431 = vmatpush3.bf16.msra.mxu1 %v439_v0  ;;  %v448_v5 = vld [vmem:[%s662_s0 + $0x20] sm:$0xff]   ;;  %v449_v9 = vld [vmem:[%s662_s0 + $0x28] sm:$0xff]   ;;  %v446_v10 = vld [vmem:[%s662_s0 + $0x10] sm:$0xff]  }
   0x4   :  { %402 = vmatprep.subr.bf16.mxu0 %v440_v1  ;;  %427 = vmatprep.subr.bf16.mxu1 %v440_v1  ;;  %v443_v6 = vld [vmem:[%s661_s1 + $0x20] ss:$0 sps:$4 sm:$0xff]   ;;  %v450_v11 = vld [vmem:[%s662_s0 + $0x30] sm:$0xff]   ;;  %v447_v12 = vld [vmem:[%s662_s0 + $0x18] sm:$0xff]  }
   0x5   :  { %410 = vmatprep.mubr.msk.bf16.mxu0 %vm107_vm0, %v444_v3  ;;  %418 = vmatprep.mubr.msk.bf16.mxu1 %vm107_vm0, %v448_v5  ;;  %v134_v7 = vsel %vm132_vm1, %v443_v6, 0  ;;  %v451_v13 = vld [vmem:[%s662_s0 + $0x38] sm:$0xff]  }
   0x7   :  { %403 = vmatpush3.bf16.msra.mxu0 %v440_v1  ;;  %432 = vmatpush3.bf16.msra.mxu1 %v440_v1 }
   0x8   :  { %404 = vmatprep.subr.bf16.mxu0 %v441_v2  ;;  %428 = vmatprep.subr.bf16.mxu1 %v441_v2 }
   0xb   :  { %405 = vmatpush3.bf16.msra.mxu0 %v441_v2  ;;  %433 = vmatpush3.bf16.msra.mxu1 %v441_v2 }
   0xc   :  { %406 = vmatprep.subr.bf16.mxu0 %v442_v4  ;;  %429 = vmatprep.subr.bf16.mxu1 %v442_v4 }
   0xf   :  { %407 = vmatpush3.bf16.msra.mxu0 %v442_v4  ;;  %434 = vmatpush3.bf16.msra.mxu1 %v442_v4 }
  0x10   :  { %436 = vmatprep.subr.msk.bf16.mxu0 %vm132_vm1, %v443_v6  ;;  %437 = vmatprep.subr.msk.bf16.mxu1 %vm132_vm1, %v443_v6 }
  0x13   :  { %409 = vmatpush3.bf16.msra.mxu0 %v134_v7  ;;  %435 = vmatpush3.bf16.msra.mxu1 %v134_v7 }
  0x16   :  { %411 = vmatmul.mubr.msk.bf16.vlgmr.msra.gmra.mrb[0].mxu0 %vm107_vm0, %v445_v8  ;;  %419 = vmatmul.mubr.msk.bf16.vlgmr.msra.gmra.mrb[0].mxu1 %vm107_vm0, %v449_v9 }
  0x17   :  { %414 = vmatprep.mubr.msk.bf16.mxu0 %vm107_vm0, %v446_v10  ;;  %422 = vmatprep.mubr.msk.bf16.mxu1 %vm107_vm0, %v450_v11 }
  0x1e   :  { %415 = vmatmul.mubr.msk.bf16.gmra.mrb[4].mxu0 %vm107_vm0, %v447_v12  ;;  %423 = vmatmul.mubr.msk.bf16.gmra.mrb[4].mxu1 %vm107_vm0, %v451_v13 }
  0xe9   :  { %v412_v15 = vpop.f32.mrb[0].mxu0  ;;  %v533_v16 = vpop.f32.mrb[0].mxu1 }
  0xea   :  { %236 = vst.msk [vmem:[%s665_s2 + $0x10] sm:$0xff] %vm233_vm3, %v412_v15  ;;  %v170_v17 = vpop.f32.mrb[1].mxu0  ;;  %244 = vst.msk [vmem:[%s665_s2 + $0x50] sm:$0xff] %vm233_vm3, %v533_v16  ;;  %v202_v18 = vpop.f32.mrb[1].mxu1  ;;  %v301_v24 = vmul.f32 %v412_v15, %v412_v15  ;;  %v261_v29 = vsel %vm233_vm3, %v412_v15, 0.0  ;;  %v309_v10 = vmul.f32 %v533_v16, %v533_v16  ;;  %v277_v14 = vsel %vm233_vm3, %v533_v16, 0.0 }
  0xeb   :  { %234 = vst.msk [vmem:[%s665_s2] sm:$0xff] %vm233_vm3, %v170_v17  ;;  %v299_v19 = vmul.f32 %v170_v17, %v170_v17  ;;  %v413_v20 = vpop.f32.mrb[2].mxu0  ;;  %242 = vst.msk [vmem:[%s665_s2 + $0x40] sm:$0xff] %vm233_vm3, %v202_v18  ;;  %v552_v21 = vpop.f32.mrb[2].mxu1  ;;  %v258_v25 = vsel %vm233_vm3, %v170_v17, 0.0  ;;  %v307_v61 = vmul.f32 %v202_v18, %v202_v18  ;;  %v273_v2 = vsel %vm233_vm3, %v202_v18, 0.0 }
  0xec   :  { %237 = vst.msk [vmem:[%s665_s2 + $0x18] sm:$0xff] %vm233_vm3, %v413_v20  ;;  %v173_v22 = vpop.f32.mrb[3].mxu0  ;;  %245 = vst.msk [vmem:[%s665_s2 + $0x58] sm:$0xff] %vm233_vm3, %v552_v21  ;;  %v205_v23 = vpop.f32.mrb[3].mxu1  ;;  %v302_v31 = vmul.f32 %v413_v20, %v413_v20  ;;  %v318_v35 = vsel %vm233_vm3, %v301_v24, 0.0  ;;  %v263_v36 = vsel %vm233_vm3, %v413_v20, 0.0  ;;  %v310_v15 = vmul.f32 %v552_v21, %v552_v21 }
  0xed   :  { %235 = vst.msk [vmem:[%s665_s2 + $0x8] sm:$0xff] %vm233_vm3, %v173_v22  ;;  %v259_v26 = vsel %vm233_vm3, %v173_v22, 0.0  ;;  %v300_v27 = vmul.f32 %v173_v22, %v173_v22  ;;  %243 = vst.msk [vmem:[%s665_s2 + $0x48] sm:$0xff] %vm233_vm3, %v205_v23  ;;  %v315_v30 = vsel %vm233_vm3, %v299_v19, 0.0  ;;  %v330_v6 = vsel %vm233_vm3, %v307_v61, 0.0 }
  0xee   :  { %v260_v28 = vadd.f32 %v259_v26, %v258_v25  ;;  %v320_v43 = vsel %vm233_vm3, %v302_v31, 0.0  ;;  %v308_v7 = vmul.f32 %v205_v23, %v205_v23  ;;  %v275_v11 = vsel %vm233_vm3, %v205_v23, 0.0 }
  0xef   :  { %v316_v32 = vsel %vm233_vm3, %v300_v27, 0.0  ;;  %v334_v22 = vsel %vm233_vm3, %v309_v10, 0.0  ;;  %v279_v24 = vsel %vm233_vm3, %v552_v21, 0.0  ;;  %v336_v27 = vsel %vm233_vm3, %v310_v15, 0.0 }
  0xf0   :  { %v262_v33 = vadd.f32 %v261_v29, %v260_v28  ;;  %v317_v34 = vadd.f32 %v316_v32, %v315_v30  ;;  %v332_v17 = vsel %vm233_vm3, %v308_v7, 0.0 }
  0xf1   :  { %v416_v37 = vpop.f32.mrb[4].mxu0  ;;  %v578_v38 = vpop.f32.mrb[4].mxu1 }
  0xf2   :  { %v319_v39 = vadd.f32 %v318_v35, %v317_v34  ;;  %240 = vst.msk [vmem:[%s665_s2 + $0x30] sm:$0xff] %vm233_vm3, %v416_v37  ;;  %v186_v40 = vpop.f32.mrb[5].mxu0  ;;  %v264_v41 = vadd.f32 %v263_v36, %v262_v33  ;;  %248 = vst.msk [vmem:[%s665_s2 + $0x70] sm:$0xff] %vm233_vm3, %v578_v38  ;;  %v218_v42 = vpop.f32.mrb[5].mxu1  ;;  %v305_v52 = vmul.f32 %v416_v37, %v416_v37  ;;  %v269_v58 = vsel %vm233_vm3, %v416_v37, 0.0 }
  0xf3   :  { %238 = vst.msk [vmem:[%s665_s2 + $0x20] sm:$0xff] %vm233_vm3, %v186_v40  ;;  %v265_v44 = vsel %vm233_vm3, %v186_v40, 0.0  ;;  %v303_v45 = vmul.f32 %v186_v40, %v186_v40  ;;  %v417_v46 = vpop.f32.mrb[6].mxu0  ;;  %246 = vst.msk [vmem:[%s665_s2 + $0x60] sm:$0xff] %vm233_vm3, %v218_v42  ;;  %v425_v47 = vpop.f32.mrb[6].mxu1  ;;  %v311_v18 = vmul.f32 %v218_v42, %v218_v42  ;;  %v281_v23 = vsel %vm233_vm3, %v218_v42, 0.0 }
  0xf4   :  { %v266_v48 = vadd.f32 %v265_v44, %v264_v41  ;;  %v321_v49 = vadd.f32 %v320_v43, %v319_v39  ;;  %241 = vst.msk [vmem:[%s665_s2 + $0x38] sm:$0xff] %vm233_vm3, %v417_v46  ;;  %v189_v50 = vpop.f32.mrb[7].mxu0  ;;  %249 = vst.msk [vmem:[%s665_s2 + $0x78] sm:$0xff] %vm233_vm3, %v425_v47  ;;  %v221_v51 = vpop.f32.mrb[7].mxu1  ;;  %v306_v59 = vmul.f32 %v417_v46, %v417_v46  ;;  %v326_v0 = vsel %vm233_vm3, %v305_v52, 0.0 }
  0xf5   :  { %v322_v53 = vsel %vm233_vm3, %v303_v45, 0.0  ;;  %239 = vst.msk [vmem:[%s665_s2 + $0x28] sm:$0xff] %vm233_vm3, %v189_v50  ;;  %v267_v54 = vsel %vm233_vm3, %v189_v50, 0.0  ;;  %v304_v55 = vmul.f32 %v189_v50, %v189_v50  ;;  %247 = vst.msk [vmem:[%s665_s2 + $0x68] sm:$0xff] %vm233_vm3, %v221_v51  ;;  %v271_v1 = vsel %vm233_vm3, %v417_v46, 0.0 }
  0xf6   :  { %v323_v56 = vadd.f32 %v322_v53, %v321_v49  ;;  %v268_v57 = vadd.f32 %v267_v54, %v266_v48  ;;  %v328_v5 = vsel %vm233_vm3, %v306_v59, 0.0  ;;  %v338_v16 = vsel %vm233_vm3, %v311_v18, 0.0 }
  0xf7   :  { %v324_v60 = vsel %vm233_vm3, %v304_v55, 0.0  ;;  %v312_v28 = vmul.f32 %v221_v51, %v221_v51  ;;  %v313_v31 = vmul.f32 %v578_v38, %v578_v38  ;;  %v283_v32 = vsel %vm233_vm3, %v221_v51, 0.0  ;;  %v257_v55 = vld [vmem:[%s663_s3] sm:$0x1] }
  0xf8   :  { %v270_v62 = vadd.f32 %v269_v58, %v268_v57  ;;  %v325_v63 = vadd.f32 %v324_v60, %v323_v56  ;;  %v285_v21 = vsel %vm233_vm3, %v578_v38, 0.0  ;;  %v314_v35 = vmul.f32 %v425_v47, %v425_v47  ;;  %v298_v57 = vld [vmem:[%s664_s4] sm:$0x1] }
  0xf9   :  { %v340_v36 = vsel %vm233_vm3, %v312_v28, 0.0  ;;  %v342_v40 = vsel %vm233_vm3, %v313_v31, 0.0  ;;  %v287_v41 = vsel %vm233_vm3, %v425_v47, 0.0 }
  0xfa   :  { %v327_v3 = vadd.f32 %v326_v0, %v325_v63  ;;  %v272_v4 = vadd.f32 %v271_v1, %v270_v62  ;;  %v344_v44 = vsel %vm233_vm3, %v314_v35, 0.0 }
  0xfc   :  { %v274_v8 = vadd.f32 %v273_v2, %v272_v4  ;;  %v329_v9 = vadd.f32 %v328_v5, %v327_v3 }
  0xfe   :  { %v331_v12 = vadd.f32 %v330_v6, %v329_v9  ;;  %v276_v13 = vadd.f32 %v275_v11, %v274_v8 }
 0x100   :  { %v278_v19 = vadd.f32 %v277_v14, %v276_v13  ;;  %v333_v20 = vadd.f32 %v332_v17, %v331_v12 }
 0x102   :  { %v335_v25 = vadd.f32 %v334_v22, %v333_v20  ;;  %v280_v26 = vadd.f32 %v279_v24, %v278_v19 }
 0x104   :  { %v282_v29 = vadd.f32 %v281_v23, %v280_v26  ;;  %v337_v30 = vadd.f32 %v336_v27, %v335_v25 }
 0x106   :  { %v339_v33 = vadd.f32 %v338_v16, %v337_v30  ;;  %v284_v34 = vadd.f32 %v283_v32, %v282_v29 }
 0x108   :  { %v286_v37 = vadd.f32 %v285_v21, %v284_v34  ;;  %v341_v39 = vadd.f32 %v340_v36, %v339_v33 }
 0x10a   :  { %v288_v42 = vadd.f32 %v287_v41, %v286_v37  ;;  %v343_v43 = vadd.f32 %v342_v40, %v341_v39 }
 0x10c   :  { %v289_v45 = vrot.slane %v288_v42, 4  ;;  %v345_v46 = vadd.f32 %v344_v44, %v343_v43 }
 0x10e   :  { %v290_v48 = vadd.f32 %v289_v45, %v288_v42  ;;  %v346_v49 = vrot.slane %v345_v46, 4 }
 0x110   :  { %v291_v50 = vrot.slane %v290_v48, 2  ;;  %v347_v51 = vadd.f32 %v346_v49, %v345_v46 }
 0x112   :  { %v292_v38 = vadd.f32 %v291_v50, %v290_v48  ;;  %v348_v52 = vrot.slane %v347_v51, 2 }
 0x114   :  { %v293_v53 = vrot.slane %v292_v38, 1  ;;  %v349_v54 = vadd.f32 %v348_v52, %v347_v51 }
 0x116   :  { %v294_v56 = vadd.f32 %v293_v53, %v292_v38  ;;  %v350_v47 = vrot.slane %v349_v54, 1 }
 0x118   :  { %v295_v58 = vadd.f32 %v294_v56, %v257_v55  ;;  %v351_v59 = vadd.f32 %v350_v47, %v349_v54 }
 0x11a   :  { %297 = vst.msk [vmem:[%s663_s3] sm:$0x1] %vm254_vm2, %v295_v58  ;;  %v352_v60 = vadd.f32 %v351_v59, %v298_v57 }
 0x11c   :  { %353 = vst.msk [vmem:[%s664_s4] sm:$0x1] %vm254_vm2, %v352_v60 }

// kernel: basic_block_forward.8
= control target key start
LH: loop header
LB: loop body
LE: loop exit
PB: predicated region body
PF: predicated region fallthrough
CT: control target
= control target key end

     0   :  { %vm97_vm0 = vcmask 1041408   ;;  %vm72_vm1 = vcmask 31744   ;;  %vm219_vm2 = vcmask 57344   ;;  %v387_v10 = vmov 0.0   ;;  %s578_s1 = inlined_call_operand.vmem [shape: bf16[4,8], index: 1, kind: input, shape index: {}]   ;;  %s579_s0 = inlined_call_operand.vmem [shape: bf16[128,4], index: 0, kind: input, shape index: {}]   ;;  %s580_s3 = inlined_call_operand.vmem [shape: f32[1,8], index: 3, kind: output, shape index: {1}]   ;;  %s581_s4 = inlined_call_operand.vmem [shape: f32[1,8], index: 4, kind: output, shape index: {2}]   ;;  %s582_s2 = inlined_call_operand.vmem [shape: f32[128,8], index: 2, kind: output, shape index: {0}]  }
   0x1   :  { %v31_v0 = vld [vmem:[%s578_s1] sm:$0x3]  ;;  %v380_v3 = vld [vmem:[%s579_s0 + $0x8] sm:$0xff]   ;;  %v381_v4 = vld [vmem:[%s579_s0 + $0x10] sm:$0xff]   ;;  %220 = vst.msk [vmem:[%s580_s3] sm:$0x1] %vm219_vm2, %v387_v10 }
   0x2   :  { %376 = vmatprep.subr.msk.bf16.mxu0 %vm97_vm0, %v31_v0  ;;  %v99_v1 = vsel %vm97_vm0, %v31_v0, 0  ;;  %v379_v2 = vld [vmem:[%s579_s0] sm:$0xff]   ;;  %377 = vmatprep.subr.msk.bf16.mxu1 %vm97_vm0, %v31_v0  ;;  %v384_v6 = vld [vmem:[%s579_s0 + $0x28] sm:$0xff]   ;;  %v385_v7 = vld [vmem:[%s579_s0 + $0x30] sm:$0xff]   ;;  %221 = vst.msk [vmem:[%s581_s4] sm:$0x1] %vm219_vm2, %v387_v10 }
   0x3   :  { %357 = vmatpush3.bf16.msra.mxu0 %v99_v1  ;;  %375 = vmatpush3.bf16.msra.mxu1 %v99_v1  ;;  %v383_v5 = vld [vmem:[%s579_s0 + $0x20] sm:$0xff]   ;;  %v382_v8 = vld [vmem:[%s579_s0 + $0x18] sm:$0xff]   ;;  %vm198_vm3 = vcmask 64512  }
   0x4   :  { %358 = vmatprep.mubr.msk.bf16.mxu0 %vm72_vm1, %v379_v2  ;;  %366 = vmatprep.mubr.msk.bf16.mxu1 %vm72_vm1, %v383_v5  ;;  %v386_v9 = vld [vmem:[%s579_s0 + $0x38] sm:$0xff]  }
   0x6   :  { %359 = vmatmul.mubr.msk.bf16.vlgmr.msra.gmra.mrb[0].mxu0 %vm72_vm1, %v380_v3  ;;  %367 = vmatmul.mubr.msk.bf16.vlgmr.msra.gmra.mrb[0].mxu1 %vm72_vm1, %v384_v6 }
   0x7   :  { %362 = vmatprep.mubr.msk.bf16.mxu0 %vm72_vm1, %v381_v4  ;;  %370 = vmatprep.mubr.msk.bf16.mxu1 %vm72_vm1, %v385_v7 }
   0xe   :  { %363 = vmatmul.mubr.msk.bf16.gmra.mrb[4].mxu0 %vm72_vm1, %v382_v8  ;;  %371 = vmatmul.mubr.msk.bf16.gmra.mrb[4].mxu1 %vm72_vm1, %v386_v9 }
  0xd9   :  { %v360_v11 = vpop.f32.mrb[0].mxu0  ;;  %v468_v16 = vpop.f32.mrb[0].mxu1 }
  0xda   :  { %201 = vst.msk [vmem:[%s582_s2 + $0x10] sm:$0xff] %vm198_vm3, %v360_v11  ;;  %v135_v12 = vpop.f32.mrb[1].mxu0  ;;  %v266_v17 = vmul.f32 %v360_v11, %v360_v11  ;;  %209 = vst.msk [vmem:[%s582_s2 + $0x50] sm:$0xff] %vm198_vm3, %v468_v16  ;;  %v167_v21 = vpop.f32.mrb[1].mxu1  ;;  %v226_v24 = vsel %vm198_vm3, %v360_v11, 0.0  ;;  %v274_v6 = vmul.f32 %v468_v16, %v468_v16  ;;  %v242_v10 = vsel %vm198_vm3, %v468_v16, 0.0 }
  0xdb   :  { %199 = vst.msk [vmem:[%s582_s2] sm:$0xff] %vm198_vm3, %v135_v12  ;;  %v264_v13 = vmul.f32 %v135_v12, %v135_v12  ;;  %v361_v14 = vpop.f32.mrb[2].mxu0  ;;  %v223_v18 = vsel %vm198_vm3, %v135_v12, 0.0  ;;  %207 = vst.msk [vmem:[%s582_s2 + $0x40] sm:$0xff] %vm198_vm3, %v167_v21  ;;  %v485_v23 = vpop.f32.mrb[2].mxu1  ;;  %v272_v56 = vmul.f32 %v167_v21, %v167_v21  ;;  %v238_v62 = vsel %vm198_vm3, %v167_v21, 0.0 }
  0xdc   :  { %202 = vst.msk [vmem:[%s582_s2 + $0x18] sm:$0xff] %vm198_vm3, %v361_v14  ;;  %v138_v15 = vpop.f32.mrb[3].mxu0  ;;  %v267_v26 = vmul.f32 %v361_v14, %v361_v14  ;;  %210 = vst.msk [vmem:[%s582_s2 + $0x58] sm:$0xff] %vm198_vm3, %v485_v23  ;;  %v170_v28 = vpop.f32.mrb[3].mxu1  ;;  %v283_v31 = vsel %vm198_vm3, %v266_v17, 0.0  ;;  %v228_v32 = vsel %vm198_vm3, %v361_v14, 0.0  ;;  %v275_v11 = vmul.f32 %v485_v23, %v485_v23 }
  0xdd   :  { %200 = vst.msk [vmem:[%s582_s2 + $0x8] sm:$0xff] %vm198_vm3, %v138_v15  ;;  %v224_v19 = vsel %vm198_vm3, %v138_v15, 0.0  ;;  %v265_v20 = vmul.f32 %v138_v15, %v138_v15  ;;  %v280_v25 = vsel %vm198_vm3, %v264_v13, 0.0  ;;  %208 = vst.msk [vmem:[%s582_s2 + $0x48] sm:$0xff] %vm198_vm3, %v170_v28  ;;  %v295_v2 = vsel %vm198_vm3, %v272_v56, 0.0 }
  0xde   :  { %v225_v22 = vadd.f32 %v224_v19, %v223_v18  ;;  %v285_v37 = vsel %vm198_vm3, %v267_v26, 0.0  ;;  %v273_v3 = vmul.f32 %v170_v28, %v170_v28  ;;  %v240_v7 = vsel %vm198_vm3, %v170_v28, 0.0 }
  0xdf   :  { %v281_v27 = vsel %vm198_vm3, %v265_v20, 0.0  ;;  %v299_v17 = vsel %vm198_vm3, %v274_v6, 0.0  ;;  %v244_v18 = vsel %vm198_vm3, %v485_v23, 0.0 }
  0xe0   :  { %v227_v29 = vadd.f32 %v226_v24, %v225_v22  ;;  %v282_v30 = vadd.f32 %v281_v27, %v280_v25  ;;  %v297_v12 = vsel %vm198_vm3, %v273_v3, 0.0  ;;  %v301_v22 = vsel %vm198_vm3, %v275_v11, 0.0 }
  0xe1   :  { %v364_v33 = vpop.f32.mrb[4].mxu0  ;;  %v372_v44 = vpop.f32.mrb[4].mxu1 }
  0xe2   :  { %v284_v34 = vadd.f32 %v283_v31, %v282_v30  ;;  %205 = vst.msk [vmem:[%s582_s2 + $0x30] sm:$0xff] %vm198_vm3, %v364_v33  ;;  %v151_v35 = vpop.f32.mrb[5].mxu0  ;;  %v229_v36 = vadd.f32 %v228_v32, %v227_v29  ;;  %v270_v45 = vmul.f32 %v364_v33, %v364_v33  ;;  %213 = vst.msk [vmem:[%s582_s2 + $0x70] sm:$0xff] %vm198_vm3, %v372_v44  ;;  %v183_v49 = vpop.f32.mrb[5].mxu1  ;;  %v234_v53 = vsel %vm198_vm3, %v364_v33, 0.0 }
  0xe3   :  { %203 = vst.msk [vmem:[%s582_s2 + $0x20] sm:$0xff] %vm198_vm3, %v151_v35  ;;  %v230_v38 = vsel %vm198_vm3, %v151_v35, 0.0  ;;  %v268_v39 = vmul.f32 %v151_v35, %v151_v35  ;;  %v365_v40 = vpop.f32.mrb[6].mxu0  ;;  %211 = vst.msk [vmem:[%s582_s2 + $0x60] sm:$0xff] %vm198_vm3, %v183_v49  ;;  %v373_v52 = vpop.f32.mrb[6].mxu1  ;;  %v276_v13 = vmul.f32 %v183_v49, %v183_v49  ;;  %v246_v19 = vsel %vm198_vm3, %v183_v49, 0.0 }
  0xe4   :  { %v231_v41 = vadd.f32 %v230_v38, %v229_v36  ;;  %v286_v42 = vadd.f32 %v285_v37, %v284_v34  ;;  %206 = vst.msk [vmem:[%s582_s2 + $0x38] sm:$0xff] %vm198_vm3, %v365_v40  ;;  %v154_v43 = vpop.f32.mrb[7].mxu0  ;;  %v271_v54 = vmul.f32 %v365_v40, %v365_v40  ;;  %214 = vst.msk [vmem:[%s582_s2 + $0x78] sm:$0xff] %vm198_vm3, %v373_v52  ;;  %v186_v57 = vpop.f32.mrb[7].mxu1  ;;  %v291_v60 = vsel %vm198_vm3, %v270_v45, 0.0 }
  0xe5   :  { %v287_v46 = vsel %vm198_vm3, %v268_v39, 0.0  ;;  %204 = vst.msk [vmem:[%s582_s2 + $0x28] sm:$0xff] %vm198_vm3, %v154_v43  ;;  %v232_v47 = vsel %vm198_vm3, %v154_v43, 0.0  ;;  %v269_v48 = vmul.f32 %v154_v43, %v154_v43  ;;  %212 = vst.msk [vmem:[%s582_s2 + $0x68] sm:$0xff] %vm198_vm3, %v186_v57  ;;  %v236_v61 = vsel %vm198_vm3, %v365_v40, 0.0 }
  0xe6   :  { %v288_v50 = vadd.f32 %v287_v46, %v286_v42  ;;  %v233_v51 = vadd.f32 %v232_v47, %v231_v41  ;;  %v293_v1 = vsel %vm198_vm3, %v271_v54, 0.0  ;;  %v303_v16 = vsel %vm198_vm3, %v276_v13, 0.0 }
  0xe7   :  { %v289_v55 = vsel %vm198_vm3, %v269_v48, 0.0  ;;  %v277_v24 = vmul.f32 %v186_v57, %v186_v57  ;;  %v278_v27 = vmul.f32 %v372_v44, %v372_v44  ;;  %v248_v28 = vsel %vm198_vm3, %v186_v57, 0.0 }
  0xe8   :  { %v235_v58 = vadd.f32 %v234_v53, %v233_v51  ;;  %v290_v59 = vadd.f32 %v289_v55, %v288_v50  ;;  %v250_v31 = vsel %vm198_vm3, %v372_v44, 0.0  ;;  %v279_v32 = vmul.f32 %v373_v52, %v373_v52  ;;  %v222_v50 = vld [vmem:[%s580_s3] sm:$0x1] }
  0xe9   :  { %v305_v23 = vsel %vm198_vm3, %v277_v24, 0.0  ;;  %v307_v35 = vsel %vm198_vm3, %v278_v27, 0.0  ;;  %v252_v36 = vsel %vm198_vm3, %v373_v52, 0.0  ;;  %v263_v53 = vld [vmem:[%s581_s4] sm:$0x1] }
  0xea   :  { %v292_v63 = vadd.f32 %v291_v60, %v290_v59  ;;  %v237_v0 = vadd.f32 %v236_v61, %v235_v58  ;;  %v309_v39 = vsel %vm198_vm3, %v279_v32, 0.0 }
  0xec   :  { %v239_v4 = vadd.f32 %v238_v62, %v237_v0  ;;  %v294_v5 = vadd.f32 %v293_v1, %v292_v63 }
  0xee   :  { %v296_v8 = vadd.f32 %v295_v2, %v294_v5  ;;  %v241_v9 = vadd.f32 %v240_v7, %v239_v4 }
  0xf0   :  { %v243_v14 = vadd.f32 %v242_v10, %v241_v9  ;;  %v298_v15 = vadd.f32 %v297_v12, %v296_v8 }
  0xf2   :  { %v300_v20 = vadd.f32 %v299_v17, %v298_v15  ;;  %v245_v21 = vadd.f32 %v244_v18, %v243_v14 }
  0xf4   :  { %v247_v25 = vadd.f32 %v246_v19, %v245_v21  ;;  %v302_v26 = vadd.f32 %v301_v22, %v300_v20 }
  0xf6   :  { %v304_v29 = vadd.f32 %v303_v16, %v302_v26  ;;  %v249_v30 = vadd.f32 %v248_v28, %v247_v25 }
  0xf8   :  { %v251_v33 = vadd.f32 %v250_v31, %v249_v30  ;;  %v306_v34 = vadd.f32 %v305_v23, %v304_v29 }
  0xfa   :  { %v253_v37 = vadd.f32 %v252_v36, %v251_v33  ;;  %v308_v38 = vadd.f32 %v307_v35, %v306_v34 }
  0xfc   :  { %v254_v40 = vrot.slane %v253_v37, 4  ;;  %v310_v41 = vadd.f32 %v309_v39, %v308_v38 }
  0xfe   :  { %v255_v42 = vadd.f32 %v254_v40, %v253_v37  ;;  %v311_v43 = vrot.slane %v310_v41, 4 }
 0x100   :  { %v256_v45 = vrot.slane %v255_v42, 2  ;;  %v312_v46 = vadd.f32 %v311_v43, %v310_v41 }
 0x102   :  { %v257_v44 = vadd.f32 %v256_v45, %v255_v42  ;;  %v313_v47 = vrot.slane %v312_v46, 2 }
 0x104   :  { %v258_v48 = vrot.slane %v257_v44, 1  ;;  %v314_v49 = vadd.f32 %v313_v47, %v312_v46 }
 0x106   :  { %v259_v51 = vadd.f32 %v258_v48, %v257_v44  ;;  %v315_v52 = vrot.slane %v314_v49, 1 }
 0x108   :  { %v260_v54 = vadd.f32 %v259_v51, %v222_v50  ;;  %v316_v55 = vadd.f32 %v315_v52, %v314_v49 }
 0x10a   :  { %262 = vst.msk [vmem:[%s580_s3] sm:$0x1] %vm219_vm2, %v260_v54  ;;  %v317_v56 = vadd.f32 %v316_v55, %v263_v53 }
 0x10c   :  { %318 = vst.msk [vmem:[%s581_s4] sm:$0x1] %vm219_vm2, %v317_v56 }

// kernel: basic_block_forward.9
= control target key start
LH: loop header
LB: loop body
LE: loop exit
PB: predicated region body
PF: predicated region fallthrough
CT: control target
= control target key end

     0   :  { %v78_v14 = vlaneseq  ;;  %vm213_vm0 = vcmask 64512   ;;  %s549_s1 = inlined_call_operand.vmem [shape: f32[1,8], index: 1, kind: input, shape index: {}]   ;;  %s550_s2 = inlined_call_operand.vmem [shape: f32[1,8], index: 2, kind: input, shape index: {}]   ;;  %s551_s6 = inlined_call_operand.vmem [shape: f32[1,8], index: 6, kind: input, shape index: {}]   ;;  %s552_s7 = inlined_call_operand.vmem [shape: f32[1,8], index: 7, kind: input, shape index: {}]   ;;  %s553_s3 = inlined_call_operand.vmem [shape: f32[1,8], index: 3, kind: input, shape index: {}]   ;;  %s554_s8 = inlined_call_operand.vmem [shape: f32[1,8], index: 8, kind: input, shape index: {}]   ;;  %s555_s4 = inlined_call_operand.vmem [shape: f32[1,8], index: 4, kind: input, shape index: {}]   ;;  %s556_s0 = inlined_call_operand.vmem [shape: f32[128,8], index: 0, kind: input, shape index: {}]   ;;  %s557_s9 = inlined_call_operand.vmem [shape: f32[1,8], index: 9, kind: input, shape index: {}]   ;;  %s558_s5 = inlined_call_operand.vmem [shape: f32[128,8], index: 5, kind: input, shape index: {}]   ;;  %s559_s10 = inlined_call_operand.vmem [shape: f32[128,8], index: 10, kind: output, shape index: {}]  }
   0x1   :  { %v35_v0 = vld [vmem:[%s549_s1] sm:$0x1]  ;;  %v62_v25 = vld [vmem:[%s556_s0 + $0x8] sm:$0xff]  ;;  %v63_v29 = vld [vmem:[%s556_s0 + $0x10] sm:$0xff] }
   0x2   :  { %v36_v1 = vld [vmem:[%s550_s2] sm:$0x1]  ;;  %v39_v2 = vmul.f32 0.0078125, %v35_v0  ;;  %v79_v15 = vshrl.u32 %v78_v14, 7  ;;  %v64_v30 = vld [vmem:[%s556_s0 + $0x18] sm:$0xff]  ;;  %v122_v33 = vld [vmem:[%s558_s5 + $0x8] sm:$0xff] }
   0x3   :  { %v40_v3 = vmul.f32 0.0078125, %v36_v1  ;;  %v48_v4 = vld [vmem:[%s551_s6] sm:$0x1]  ;;  %v123_v34 = vld [vmem:[%s558_s5 + $0x10] sm:$0xff]  ;;  %v124_v39 = vld [vmem:[%s558_s5 + $0x18] sm:$0xff] }
   0x4   :  { %v49_v5 = vld [vmem:[%s552_s7] sm:$0x1]  ;;  %v41_v6 = vmul.f32 %v39_v2, %v39_v2  ;;  %v52_v7 = vmul.f32 0.0078125, %v48_v4  ;;  %v80_v17 = vsub.s32 0, %v79_v15  ;;  %v66_v41 = vld [vmem:[%s556_s0 + $0x28] sm:$0xff]  ;;  %v67_v59 = vld [vmem:[%s556_s0 + $0x30] sm:$0xff] }
   0x5   :  { %v53_v8 = vmul.f32 0.0078125, %v49_v5  ;;  %v37_v16 = vld [vmem:[%s553_s3] sm:$0x1]  ;;  %v126_v50 = vld [vmem:[%s558_s5 + $0x28] sm:$0xff]  ;;  %v127_v60 = vld [vmem:[%s558_s5 + $0x30] sm:$0xff] }
   0x6   :  { %v42_v9 = vsub.f32 %v40_v3, %v41_v6  ;;  %v54_v10 = vmul.f32 %v52_v7, %v52_v7  ;;  %v50_v19 = vld [vmem:[%s554_s8] sm:$0x1]  ;;  %v128_v14 = vld [vmem:[%s558_s5 + $0x38] sm:$0xff] }
   0x7   :  { %v38_v20 = vld [vmem:[%s555_s4] sm:$0x1] }
   0x8   :  { %v43_v11 = vadd.f32 1e-05, %v42_v9  ;;  %v55_v12 = vsub.f32 %v53_v8, %v54_v10  ;;  %v51_v23 = vld [vmem:[%s557_s9] sm:$0x1] }
   0x9   :  { %v61_v24 = vld [vmem:[%s556_s0] sm:$0xff] }
   0xa   :  { %234 = vrsqrt.f32 %v43_v11  ;;  %v56_v13 = vadd.f32 1e-05, %v55_v12  ;;  %v65_v31 = vld [vmem:[%s556_s0 + $0x20] sm:$0xff] }
   0xb   :  { %v121_v32 = vld [vmem:[%s558_s5] sm:$0xff] }
   0xc   :  { %236 = vrsqrt.f32 %v56_v13  ;;  %v125_v40 = vld [vmem:[%s558_s5 + $0x20] sm:$0xff]  ;;  %v68_v13 = vld [vmem:[%s556_s0 + $0x38] sm:$0xff] }
  0x14   :  { %v235_v18 = vpop.eup %234 }
  0x15   :  { %v45_v21 = vmul.f32 %v235_v18, %v37_v16 }
  0x16   :  { %v237_v22 = vpop.eup %236 }
  0x17   :  { %v46_v26 = vmul.f32 %v45_v21, %v39_v2  ;;  %v58_v27 = vmul.f32 %v237_v22, %v50_v19  ;;  %v323_v28 = vrot.slane %v45_v21, %v80_v17  ;;  %v69_v19 = vld [vmem:[%s556_s0 + $0x40] sm:$0xff]  ;;  %v70_v21 = vld [vmem:[%s556_s0 + $0x48] sm:$0xff] }
  0x19   :  { %v47_v35 = vsub.f32 %v38_v20, %v46_v26  ;;  %v59_v36 = vmul.f32 %v58_v27, %v52_v7  ;;  %v83_v37 = vmul.f32 %v323_v28, %v61_v24  ;;  %v344_v38 = vrot.slane %v58_v27, %v80_v17  ;;  %v129_v20 = vld [vmem:[%s558_s5 + $0x40] sm:$0xff]  ;;  %v130_v26 = vld [vmem:[%s558_s5 + $0x48] sm:$0xff]  ;;  %v71_v27 = vld [vmem:[%s556_s0 + $0x50] sm:$0xff] }
  0x1a   :  { %v84_v42 = vmul.f32 %v323_v28, %v62_v25  ;;  %v85_v43 = vmul.f32 %v323_v28, %v63_v29  ;;  %v86_v44 = vmul.f32 %v323_v28, %v64_v30  ;;  %v87_v45 = vmul.f32 %v323_v28, %v65_v31 }
  0x1b   :  { %v60_v46 = vsub.f32 %v51_v23, %v59_v36  ;;  %v359_v47 = vrot.slane %v47_v35, %v80_v17  ;;  %v143_v48 = vmul.f32 %v344_v38, %v121_v32  ;;  %v144_v49 = vmul.f32 %v344_v38, %v122_v33 }
  0x1c   :  { %v145_v51 = vmul.f32 %v344_v38, %v123_v34  ;;  %v146_v52 = vmul.f32 %v344_v38, %v124_v39  ;;  %v147_v53 = vmul.f32 %v344_v38, %v125_v40  ;;  %v88_v54 = vmul.f32 %v323_v28, %v66_v41  ;;  %v72_v39 = vld [vmem:[%s556_s0 + $0x58] sm:$0xff] }
  0x1d   :  { %v105_v55 = vadd.f32 %v359_v47, %v83_v37  ;;  %v371_v56 = vrot.slane %v60_v46, %v80_v17  ;;  %v106_v57 = vadd.f32 %v359_v47, %v84_v42  ;;  %v107_v58 = vadd.f32 %v359_v47, %v85_v43  ;;  %v131_v37 = vld [vmem:[%s558_s5 + $0x50] sm:$0xff] }
  0x1e   :  { %v108_v61 = vadd.f32 %v359_v47, %v86_v44  ;;  %v109_v62 = vadd.f32 %v359_v47, %v87_v45  ;;  %v110_v63 = vadd.f32 %v359_v47, %v88_v54  ;;  %v148_v0 = vmul.f32 %v344_v38, %v126_v50  ;;  %v132_v44 = vld [vmem:[%s558_s5 + $0x58] sm:$0xff]  ;;  %v73_v45 = vld [vmem:[%s556_s0 + $0x60] sm:$0xff] }
  0x1f   :  { %v165_v1 = vadd.f32 %v371_v56, %v143_v48  ;;  %v166_v2 = vadd.f32 %v371_v56, %v144_v49  ;;  %v167_v3 = vadd.f32 %v371_v56, %v145_v51  ;;  %v168_v4 = vadd.f32 %v371_v56, %v146_v52  ;;  %v133_v51 = vld [vmem:[%s558_s5 + $0x60] sm:$0xff] }
  0x20   :  { %v169_v5 = vadd.f32 %v371_v56, %v147_v53  ;;  %v170_v6 = vadd.f32 %v371_v56, %v148_v0  ;;  %v89_v7 = vmul.f32 %v323_v28, %v67_v59  ;;  %v149_v8 = vmul.f32 %v344_v38, %v127_v60 }
  0x21   :  { %v181_v9 = vadd.f32 %v165_v1, %v105_v55  ;;  %v182_v10 = vadd.f32 %v166_v2, %v106_v57  ;;  %v183_v11 = vadd.f32 %v167_v3, %v107_v58  ;;  %v184_v12 = vadd.f32 %v168_v4, %v108_v61  ;;  %v74_v61 = vld [vmem:[%s556_s0 + $0x68] sm:$0xff]  ;;  %v75_v3 = vld [vmem:[%s556_s0 + $0x70] sm:$0xff] }
  0x22   :  { %v185_v15 = vadd.f32 %v169_v5, %v109_v62  ;;  %v186_v16 = vadd.f32 %v170_v6, %v110_v63  ;;  %v111_v17 = vadd.f32 %v359_v47, %v89_v7  ;;  %v171_v18 = vadd.f32 %v371_v56, %v149_v8  ;;  %v134_v2 = vld [vmem:[%s558_s5 + $0x68] sm:$0xff]  ;;  %v135_v4 = vld [vmem:[%s558_s5 + $0x70] sm:$0xff] }
  0x23   :  { %v197_v22 = vmax.f32 %v181_v9, 0.0  ;;  %v198_v23 = vmax.f32 %v182_v10, 0.0  ;;  %v199_v24 = vmax.f32 %v183_v11, 0.0  ;;  %v200_v25 = vmax.f32 %v184_v12, 0.0  ;;  %v76_v9 = vld [vmem:[%s556_s0 + $0x78] sm:$0xff] }
  0x24   :  { %v201_v29 = vmax.f32 %v185_v15, 0.0  ;;  %v202_v30 = vmax.f32 %v186_v16, 0.0  ;;  %v187_v31 = vadd.f32 %v171_v18, %v111_v17  ;;  %v90_v32 = vmul.f32 %v323_v28, %v68_v13  ;;  %v136_v18 = vld [vmem:[%s558_s5 + $0x78] sm:$0xff] }
  0x25   :  { %214 = vst.msk [vmem:[%s559_s10] sm:$0xff] %vm213_vm0, %v197_v22  ;;  %215 = vst.msk [vmem:[%s559_s10 + $0x8] sm:$0xff] %vm213_vm0, %v198_v23  ;;  %v150_v33 = vmul.f32 %v344_v38, %v128_v14  ;;  %v91_v34 = vmul.f32 %v323_v28, %v69_v19  ;;  %v151_v35 = vmul.f32 %v344_v38, %v129_v20 }
  0x26   :  { %216 = vst.msk [vmem:[%s559_s10 + $0x10] sm:$0xff] %vm213_vm0, %v199_v24  ;;  %217 = vst.msk [vmem:[%s559_s10 + $0x18] sm:$0xff] %vm213_vm0, %v200_v25  ;;  %v92_v36 = vmul.f32 %v323_v28, %v70_v21  ;;  %v203_v40 = vmax.f32 %v187_v31, 0.0  ;;  %v112_v41 = vadd.f32 %v359_v47, %v90_v32  ;;  %v152_v42 = vmul.f32 %v344_v38, %v130_v26 }
  0x27   :  { %218 = vst.msk [vmem:[%s559_s10 + $0x20] sm:$0xff] %vm213_vm0, %v201_v29  ;;  %219 = vst.msk [vmem:[%s559_s10 + $0x28] sm:$0xff] %vm213_vm0, %v202_v30  ;;  %v93_v43 = vmul.f32 %v323_v28, %v71_v27  ;;  %v172_v46 = vadd.f32 %v371_v56, %v150_v33  ;;  %v113_v48 = vadd.f32 %v359_v47, %v91_v34 }
  0x28   :  { %v173_v49 = vadd.f32 %v371_v56, %v151_v35  ;;  %v114_v50 = vadd.f32 %v359_v47, %v92_v36  ;;  %220 = vst.msk [vmem:[%s559_s10 + $0x30] sm:$0xff] %vm213_vm0, %v203_v40  ;;  %v174_v52 = vadd.f32 %v371_v56, %v152_v42  ;;  %v153_v54 = vmul.f32 %v344_v38, %v131_v37 }
  0x29   :  { %v115_v53 = vadd.f32 %v359_v47, %v93_v43  ;;  %v94_v55 = vmul.f32 %v323_v28, %v72_v39  ;;  %v188_v57 = vadd.f32 %v172_v46, %v112_v41  ;;  %v154_v59 = vmul.f32 %v344_v38, %v132_v44 }
  0x2a   :  { %v189_v58 = vadd.f32 %v173_v49, %v113_v48  ;;  %v95_v60 = vmul.f32 %v323_v28, %v73_v45  ;;  %v190_v62 = vadd.f32 %v174_v52, %v114_v50  ;;  %v175_v63 = vadd.f32 %v371_v56, %v153_v54 }
  0x2b   :  { %v116_v0 = vadd.f32 %v359_v47, %v94_v55  ;;  %v155_v1 = vmul.f32 %v344_v38, %v133_v51  ;;  %v204_v5 = vmax.f32 %v188_v57, 0.0  ;;  %v176_v7 = vadd.f32 %v371_v56, %v154_v59 }
  0x2c   :  { %v205_v6 = vmax.f32 %v189_v58, 0.0  ;;  %v117_v8 = vadd.f32 %v359_v47, %v95_v60  ;;  %v206_v10 = vmax.f32 %v190_v62, 0.0  ;;  %v191_v11 = vadd.f32 %v175_v63, %v115_v53 }
  0x2d   :  { %v177_v12 = vadd.f32 %v371_v56, %v155_v1  ;;  %v96_v13 = vmul.f32 %v323_v28, %v74_v61  ;;  %221 = vst.msk [vmem:[%s559_s10 + $0x38] sm:$0xff] %vm213_vm0, %v204_v5  ;;  %v192_v14 = vadd.f32 %v176_v7, %v116_v0  ;;  %v156_v15 = vmul.f32 %v344_v38, %v134_v2 }
  0x2e   :  { %222 = vst.msk [vmem:[%s559_s10 + $0x40] sm:$0xff] %vm213_vm0, %v205_v6  ;;  %v97_v16 = vmul.f32 %v323_v28, %v75_v3  ;;  %v157_v17 = vmul.f32 %v344_v38, %v135_v4  ;;  %223 = vst.msk [vmem:[%s559_s10 + $0x48] sm:$0xff] %vm213_vm0, %v206_v10  ;;  %v207_v19 = vmax.f32 %v191_v11, 0.0  ;;  %v98_v22 = vmul.f32 %v323_v28, %v76_v9 }
  0x2f   :  { %v193_v20 = vadd.f32 %v177_v12, %v117_v8  ;;  %v118_v21 = vadd.f32 %v359_v47, %v96_v13  ;;  %v208_v23 = vmax.f32 %v192_v14, 0.0  ;;  %v178_v24 = vadd.f32 %v371_v56, %v156_v15 }
  0x30   :  { %v119_v25 = vadd.f32 %v359_v47, %v97_v16  ;;  %v179_v26 = vadd.f32 %v371_v56, %v157_v17  ;;  %224 = vst.msk [vmem:[%s559_s10 + $0x50] sm:$0xff] %vm213_vm0, %v207_v19  ;;  %v120_v29 = vadd.f32 %v359_v47, %v98_v22  ;;  %v158_v30 = vmul.f32 %v344_v38, %v136_v18 }
  0x31   :  { %v209_v27 = vmax.f32 %v193_v20, 0.0  ;;  %225 = vst.msk [vmem:[%s559_s10 + $0x58] sm:$0xff] %vm213_vm0, %v208_v23  ;;  %v194_v28 = vadd.f32 %v178_v24, %v118_v21 }
  0x32   :  { %v195_v31 = vadd.f32 %v179_v26, %v119_v25  ;;  %v180_v32 = vadd.f32 %v371_v56, %v158_v30 }
  0x33   :  { %226 = vst.msk [vmem:[%s559_s10 + $0x60] sm:$0xff] %vm213_vm0, %v209_v27  ;;  %v210_v33 = vmax.f32 %v194_v28, 0.0 }
  0x34   :  { %v211_v34 = vmax.f32 %v195_v31, 0.0  ;;  %v196_v35 = vadd.f32 %v180_v32, %v120_v29 }
  0x35   :  { %227 = vst.msk [vmem:[%s559_s10 + $0x68] sm:$0xff] %vm213_vm0, %v210_v33 }
  0x36   :  { %228 = vst.msk [vmem:[%s559_s10 + $0x70] sm:$0xff] %vm213_vm0, %v211_v34  ;;  %v212_v38 = vmax.f32 %v196_v35, 0.0 }
  0x38   :  { %229 = vst.msk [vmem:[%s559_s10 + $0x78] sm:$0xff] %vm213_vm0, %v212_v38 }

</bundles_post_ra>
